<compile_context>
chip_gen: v7x
topology: tpu7x:2x2x1
jax: 0.10.0
libtpu: 0.0.40
codegen_flags: <defaults>
</compile_context>

<pallas_src>
import functools

import jax
import jax.numpy as jnp
from jax import lax
from jax.experimental import pallas as pl
from jax.experimental.pallas import tpu as pltpu

GAUSSIAN_SIGMAS = (0.5, 1.0, 2.0, 4.0, 8.0)
K_SSIM = (0.01, 0.03)
ALPHA = 0.025
COMPENSATION = 20.0
FILTER_SIZE = int(4 * GAUSSIAN_SIGMAS[-1] + 1)   # 33
PAD = int(2 * GAUSSIAN_SIGMAS[-1])               # 16
NUM_FILTERS = len(GAUSSIAN_SIGMAS)               # 5


# ----------------------------- parameter setup ------------------------------
def _gauss_1d(size, sigma):
    coords = jnp.arange(size, dtype=jnp.float32) - (size // 2)
    g = jnp.exp(-(coords ** 2) / (2.0 * sigma ** 2))
    return g / jnp.sum(g)


def make_g_masks():
    # (5, 1, 33, 33) -- deterministic, identical to the torch buffer.
    g1s = [_gauss_1d(FILTER_SIZE, s) for s in GAUSSIAN_SIGMAS]
    return jnp.stack([jnp.outer(g, g) for g in g1s], axis=0)[:, None, :, :]


def _band_matrix(g1d, n):
    """B[i, k] = g1d[k - i + PAD] when 0 <= k - i + PAD < FILTER_SIZE else 0.

    (n, n) vertical band with the zero padding of conv2d(padding=PAD) folded
    in (edge taps clipped), so images are consumed unpadded and the matmul
    contraction dim is exactly n.
    """
    rows = jnp.arange(n)[:, None]
    cols = jnp.arange(n)[None, :]
    d = cols - rows + PAD
    valid = (d >= 0) & (d < FILTER_SIZE)
    return jnp.where(valid, g1d[jnp.clip(d, 0, FILTER_SIZE - 1)], 0.0)


def _pick_batch_tile(N, H, W, vmem_budget_bytes=8 << 20):
    """Largest TB that divides N, keeps >= 2 grid steps (v7x has 2 TCs), and
    keeps the double-buffered image blocks well inside VMEM."""
    per_image_bytes = 2 * 2 * H * W * 4          # x and y, double-buffered f32
    cap = max(1, vmem_budget_bytes // per_image_bytes)
    tb = 1
    for cand in range(2, min(N, cap) + 1):
        if N % cand == 0 and N // cand >= 2:
            tb = cand
    return tb


# --------------------------------- kernel -----------------------------------
def _ms_ssim_l1_kernel(x_ref, y_ref, bh_ref, bw_ref, out_ref, *,
                       TB, H, W, C1, C2, alpha, compensation, data_range):
    bh = bh_ref[...]                 # (5H, H)  stacked vertical Gaussian bands
    bw = bw_ref[...]                 # (5, W, W) horizontal Gaussian bands
    dot = functools.partial(jnp.dot, preferred_element_type=jnp.float32)
    NF = NUM_FILTERS

    def one_image(x, y):
        # x, y: (H, W) f32.  Elementwise quantities on the unpadded tile; the
        # band matrices implement the zero-padded conv exactly.
        x2 = x * x
        y2 = y * y
        xy = x * y
        ad = jnp.abs(x - y)

        # Fused vertical pass: all 5 filters x all 6 quantities, one matmul.
        x6 = jnp.concatenate([x, y, x2, y2, xy, ad], axis=1)       # (H, 6W)
        v = dot(bh, x6)                                            # (5H, 6W)

        pics = None
        lum_last = None
        gaussian_l1 = None
        for s in range(NF):
            r0 = s * H
            nq = 6 if s == NF - 1 else 5   # |x-y| only needed for the last filter
            # Fused horizontal pass for this filter: stack the vertically
            # filtered quantities along rows, one matmul against bw[s].
            lhs = jnp.concatenate(
                [v[r0:r0 + H, q * W:(q + 1) * W] for q in range(nq)], axis=0)
            r = dot(lhs, bw[s])                                     # (nq*H, W)

            mux = r[0:H]
            muy = r[H:2 * H]
            ex2 = r[2 * H:3 * H]
            ey2 = r[3 * H:4 * H]
            exy = r[4 * H:5 * H]

            mux2 = mux * mux
            muy2 = muy * muy
            muxy = mux * muy
            sigmax2 = ex2 - mux2
            sigmay2 = ey2 - muy2
            sigmaxy = exy - muxy

            cs = (2.0 * sigmaxy + C2) / (sigmax2 + sigmay2 + C2)
            pics = cs if pics is None else pics * cs
            if s == NF - 1:
                lum_last = (2.0 * muxy + C1) / (mux2 + muy2 + C1)
                # conv(|x-y|, g[-1:]).mean(1) over one channel == identity.
                gaussian_l1 = r[5 * H:6 * H]

        loss_ms_ssim = 1.0 - lum_last * pics
        loss_mix = compensation * (alpha * loss_ms_ssim +
                                   (1.0 - alpha) * gaussian_l1 / data_range)
        return jnp.sum(jnp.sum(loss_mix, axis=1, keepdims=True),
                       axis=0, keepdims=True)                       # (1, 1)

    def body(b, acc):
        return acc + one_image(x_ref[b], y_ref[b])

    total = lax.fori_loop(0, TB, body, jnp.zeros((1, 1), jnp.float32))
    out_ref[0] = total


# -------------------------------- wrapper ------------------------------------
def ms_ssim_l1_loss_pallas(x, y, data_range=1.0, single_buffer_bands=True):
    """x, y: (N, 1, H, W) float32.  Returns scalar loss (matches torch module)."""
    N, C, H, W = x.shape
    # Reference module is channel-generic; this kernel covers the C == 1 case.
    assert C == 1, "pallas kernel implements the single-channel case"

    g1s = [_gauss_1d(FILTER_SIZE, s) for s in GAUSSIAN_SIGMAS]
    bh = jnp.concatenate([_band_matrix(g, H) for g in g1s], axis=0)   # (5H, H)
    bw = jnp.stack([_band_matrix(g, W).T for g in g1s], axis=0)       # (5, W, W)

    xi = x[:, 0].astype(jnp.float32)
    yi = y[:, 0].astype(jnp.float32)

    C1 = (K_SSIM[0] * data_range) ** 2
    C2 = (K_SSIM[1] * data_range) ** 2

    TB = _pick_batch_tile(N, H, W)
    assert N % TB == 0
    num_blocks = N // TB

    kernel = functools.partial(
        _ms_ssim_l1_kernel, TB=TB, H=H, W=W, C1=C1, C2=C2, alpha=ALPHA,
        compensation=COMPENSATION, data_range=data_range)

    # Grid-invariant band operands: single-buffer them (they are only DMA'd
    # once), halving their VMEM residency.
    band_kwargs = {"pipeline_mode": pl.Buffered(1)} if single_buffer_bands else {}

    per_block_sum = pl.pallas_call(
        kernel,
        out_shape=jax.ShapeDtypeStruct((num_blocks, 1, 1), jnp.float32),
        grid_spec=pltpu.PrefetchScalarGridSpec(
            num_scalar_prefetch=0,
            grid=(num_blocks,),
            in_specs=[
                pl.BlockSpec((TB, H, W), lambda n: (n, 0, 0)),
                pl.BlockSpec((TB, H, W), lambda n: (n, 0, 0)),
                pl.BlockSpec((NUM_FILTERS * H, H), lambda n: (0, 0), **band_kwargs),
                pl.BlockSpec((NUM_FILTERS, W, W), lambda n: (0, 0, 0), **band_kwargs),
            ],
            out_specs=pl.BlockSpec((1, 1, 1), lambda n: (n, 0, 0)),
        ),
        compiler_params=pltpu.CompilerParams(
            dimension_semantics=("parallel",),
            vmem_limit_bytes=48 << 20,    # headroom even on v7x (64 MiB physical)
        ),
    )(xi, yi, bh, bw)

    # Final .mean() over (N, H, W): per-block sums are already reduced in-kernel.
    return jnp.sum(per_block_sum) / (N * H * W)


# ------------------------------ pure-JAX reference ---------------------------
def ms_ssim_l1_loss_ref(x, y, data_range=1.0):
    C1 = (K_SSIM[0] * data_range) ** 2
    C2 = (K_SSIM[1] * data_range) ** 2
    g = make_g_masks()

    def conv(a, w):
        return lax.conv_general_dilated(
            a, w, (1, 1), [(PAD, PAD), (PAD, PAD)],
            dimension_numbers=('NCHW', 'OIHW', 'NCHW'),
            precision=lax.Precision.HIGHEST)

    mux = conv(x, g); muy = conv(y, g)
    mux2 = mux * mux; muy2 = muy * muy; muxy = mux * muy
    sigmax2 = conv(x * x, g) - mux2
    sigmay2 = conv(y * y, g) - muy2
    sigmaxy = conv(x * y, g) - muxy
    luminance = (2 * muxy + C1) / (mux2 + muy2 + C1)
    cs = (2 * sigmaxy + C2) / (sigmax2 + sigmay2 + C2)
    lM = luminance[:, -1]
    PIcs = jnp.prod(cs, axis=1)
    loss_ms_ssim = 1 - lM * PIcs
    loss_l1 = jnp.abs(x - y)
    gaussian_l1 = conv(loss_l1, g[-1:]).mean(axis=1)
    loss_mix = ALPHA * loss_ms_ssim + (1 - ALPHA) * gaussian_l1 / data_range
    return (COMPENSATION * loss_mix).mean()


# ---------------------------------- main --------------------------------------
if __name__ == "__main__":
    key = jax.random.PRNGKey(0)
    kx, ky = jax.random.split(key)
    N, C, H, W = 4, 1, 16, 16          # TB=2, grid=(2,): exercises in-step batching
    x = jax.random.uniform(kx, (N, C, H, W), dtype=jnp.float32)
    y = jax.random.uniform(ky, (N, C, H, W), dtype=jnp.float32)

    def run(single_buffer_bands):
        fn = jax.jit(functools.partial(ms_ssim_l1_loss_pallas,
                                       single_buffer_bands=single_buffer_bands))
        return jax.block_until_ready(fn(x, y))

    try:
        loss = run(True)
    except Exception:
        # pl.Buffered(1) single-buffering unsupported in this build; fall back
        # to the default double-buffered band specs (same numerics).
        loss = run(False)

    ref = jax.block_until_ready(ms_ssim_l1_loss_ref(x, y))
    assert jnp.isfinite(loss), loss
    assert jnp.allclose(loss, ref, rtol=1e-2, atol=1e-2), (loss, ref)

    print("KERNEL_OK")
</pallas_src>

<mosaic_0001>
module attributes {stable_mosaic.version = 11 : i64} {
  func.func @_ms_ssim_l1_kernel(%arg0: i32, %arg1: memref<2x16x16xf32, #tpu.memory_space<vmem>>, %arg2: memref<2x16x16xf32, #tpu.memory_space<vmem>>, %arg3: memref<80x16xf32, #tpu.memory_space<vmem>>, %arg4: memref<5x16x16xf32, #tpu.memory_space<vmem>>, %arg5: memref<1x1x1xf32, #tpu.memory_space<vmem>>) attributes {dimension_semantics = [#tpu.dimension_semantics<parallel>], iteration_bounds = array<i64: 2>, scalar_prefetch = 0 : i64, scratch_operands = 0 : i64, tpu.core_type = #tpu.core_type<tc>, window_params = [{transform_indices = @transform_0, window_bounds = array<i64: 2, 16, 16>}, {transform_indices = @transform_1, window_bounds = array<i64: 2, 16, 16>}, {pipeline_mode = #tpu.pipeline_mode<synchronous>, transform_indices = @transform_2, window_bounds = array<i64: 80, 16>}, {pipeline_mode = #tpu.pipeline_mode<synchronous>, transform_indices = @transform_3, window_bounds = array<i64: 5, 16, 16>}, {transform_indices = @transform_4, window_bounds = array<i64: 1, 1, 1>}]} {
    %c0 = arith.constant 0 : index
    %c0_0 = arith.constant 0 : index
    %0 = vector.load %arg3[%c0, %c0_0] : memref<80x16xf32, #tpu.memory_space<vmem>>, vector<80x16xf32>
    %c0_1 = arith.constant 0 : index
    %c0_2 = arith.constant 0 : index
    %c0_3 = arith.constant 0 : index
    %1 = vector.load %arg4[%c0_1, %c0_2, %c0_3] : memref<5x16x16xf32, #tpu.memory_space<vmem>>, vector<5x16x16xf32>
    %cst = arith.constant 0.000000e+00 : f32
    %2 = vector.broadcast %cst : f32 to vector<1x1xf32>
    %c0_i32 = arith.constant 0 : i32
    %c2_i32 = arith.constant 2 : i32
    %3 = arith.addi %c0_i32, %c2_i32 : i32
    %c1_i32 = arith.constant 1 : i32
    %4 = scf.for %arg6 = %c0_i32 to %3 step %c1_i32 iter_args(%arg7 = %2) -> (vector<1x1xf32>)  : i32 {
      %8 = arith.index_cast %arg6 : i32 to index
      %c0_8 = arith.constant 0 : index
      %c0_9 = arith.constant 0 : index
      %9 = vector.load %arg1[%8, %c0_8, %c0_9] : memref<2x16x16xf32, #tpu.memory_space<vmem>>, vector<1x16x16xf32>
      %10 = vector.shape_cast %9 : vector<1x16x16xf32> to vector<16x16xf32>
      %11 = arith.index_cast %arg6 : i32 to index
      %c0_10 = arith.constant 0 : index
      %c0_11 = arith.constant 0 : index
      %12 = vector.load %arg2[%11, %c0_10, %c0_11] : memref<2x16x16xf32, #tpu.memory_space<vmem>>, vector<1x16x16xf32>
      %13 = vector.shape_cast %12 : vector<1x16x16xf32> to vector<16x16xf32>
      %14 = arith.mulf %10, %10 : vector<16x16xf32>
      %15 = arith.mulf %13, %13 : vector<16x16xf32>
      %16 = arith.mulf %10, %13 : vector<16x16xf32>
      %17 = arith.subf %10, %13 : vector<16x16xf32>
      %18 = math.absf %17 : vector<16x16xf32>
      %19 = tpu.concatenate %10, %13, %14, %15, %16, %18 in 1 : vector<16x16xf32>, vector<16x16xf32>, vector<16x16xf32>, vector<16x16xf32>, vector<16x16xf32>, vector<16x16xf32> -> vector<16x96xf32>
      %cst_12 = arith.constant dense<0.000000e+00> : vector<80x96xf32>
      %20 = tpu.matmul %0, %19, %cst_12 {dimension_numbers = #tpu.dot_dimension_numbers<[1], [0], [0], [1], [0, 0, 1, 1], [], []>} : vector<80x16xf32>, vector<16x96xf32>, vector<80x96xf32> -> vector<80x96xf32>
      %21 = vector.extract_strided_slice %20 {offsets = [0, 0], sizes = [16, 16], strides = [1, 1]} : vector<80x96xf32> to vector<16x16xf32>
      %22 = vector.extract_strided_slice %20 {offsets = [0, 16], sizes = [16, 16], strides = [1, 1]} : vector<80x96xf32> to vector<16x16xf32>
      %23 = vector.extract_strided_slice %20 {offsets = [0, 32], sizes = [16, 16], strides = [1, 1]} : vector<80x96xf32> to vector<16x16xf32>
      %24 = vector.extract_strided_slice %20 {offsets = [0, 48], sizes = [16, 16], strides = [1, 1]} : vector<80x96xf32> to vector<16x16xf32>
      %25 = vector.extract_strided_slice %20 {offsets = [0, 64], sizes = [16, 16], strides = [1, 1]} : vector<80x96xf32> to vector<16x16xf32>
      %26 = tpu.concatenate %21, %22, %23, %24, %25 in 0 : vector<16x16xf32>, vector<16x16xf32>, vector<16x16xf32>, vector<16x16xf32>, vector<16x16xf32> -> vector<80x16xf32>
      %27 = vector.extract_strided_slice %1 {offsets = [0, 0, 0], sizes = [1, 16, 16], strides = [1, 1, 1]} : vector<5x16x16xf32> to vector<1x16x16xf32>
      %28 = vector.shape_cast %27 : vector<1x16x16xf32> to vector<16x16xf32>
      %cst_13 = arith.constant dense<0.000000e+00> : vector<80x16xf32>
      %29 = tpu.matmul %26, %28, %cst_13 {dimension_numbers = #tpu.dot_dimension_numbers<[1], [0], [0], [1], [0, 0, 1, 1], [], []>} : vector<80x16xf32>, vector<16x16xf32>, vector<80x16xf32> -> vector<80x16xf32>
      %30 = vector.extract_strided_slice %29 {offsets = [0, 0], sizes = [16, 16], strides = [1, 1]} : vector<80x16xf32> to vector<16x16xf32>
      %31 = vector.extract_strided_slice %29 {offsets = [16, 0], sizes = [16, 16], strides = [1, 1]} : vector<80x16xf32> to vector<16x16xf32>
      %32 = vector.extract_strided_slice %29 {offsets = [32, 0], sizes = [16, 16], strides = [1, 1]} : vector<80x16xf32> to vector<16x16xf32>
      %33 = vector.extract_strided_slice %29 {offsets = [48, 0], sizes = [16, 16], strides = [1, 1]} : vector<80x16xf32> to vector<16x16xf32>
      %34 = vector.extract_strided_slice %29 {offsets = [64, 0], sizes = [16, 16], strides = [1, 1]} : vector<80x16xf32> to vector<16x16xf32>
      %35 = arith.mulf %30, %30 : vector<16x16xf32>
      %36 = arith.mulf %31, %31 : vector<16x16xf32>
      %37 = arith.mulf %30, %31 : vector<16x16xf32>
      %38 = arith.subf %32, %35 : vector<16x16xf32>
      %39 = arith.subf %33, %36 : vector<16x16xf32>
      %40 = arith.subf %34, %37 : vector<16x16xf32>
      %cst_14 = arith.constant 2.000000e+00 : f32
      %41 = vector.broadcast %cst_14 : f32 to vector<16x16xf32>
      %42 = arith.mulf %41, %40 : vector<16x16xf32>
      %cst_15 = arith.constant 8.99999984E-4 : f32
      %43 = vector.broadcast %cst_15 : f32 to vector<16x16xf32>
      %44 = arith.addf %42, %43 : vector<16x16xf32>
      %45 = arith.addf %38, %39 : vector<16x16xf32>
      %cst_16 = arith.constant 8.99999984E-4 : f32
      %46 = vector.broadcast %cst_16 : f32 to vector<16x16xf32>
      %47 = arith.addf %45, %46 : vector<16x16xf32>
      %48 = arith.divf %44, %47 : vector<16x16xf32>
      %49 = vector.extract_strided_slice %20 {offsets = [16, 0], sizes = [16, 16], strides = [1, 1]} : vector<80x96xf32> to vector<16x16xf32>
      %50 = vector.extract_strided_slice %20 {offsets = [16, 16], sizes = [16, 16], strides = [1, 1]} : vector<80x96xf32> to vector<16x16xf32>
      %51 = vector.extract_strided_slice %20 {offsets = [16, 32], sizes = [16, 16], strides = [1, 1]} : vector<80x96xf32> to vector<16x16xf32>
      %52 = vector.extract_strided_slice %20 {offsets = [16, 48], sizes = [16, 16], strides = [1, 1]} : vector<80x96xf32> to vector<16x16xf32>
      %53 = vector.extract_strided_slice %20 {offsets = [16, 64], sizes = [16, 16], strides = [1, 1]} : vector<80x96xf32> to vector<16x16xf32>
      %54 = tpu.concatenate %49, %50, %51, %52, %53 in 0 : vector<16x16xf32>, vector<16x16xf32>, vector<16x16xf32>, vector<16x16xf32>, vector<16x16xf32> -> vector<80x16xf32>
      %55 = vector.extract_strided_slice %1 {offsets = [1, 0, 0], sizes = [1, 16, 16], strides = [1, 1, 1]} : vector<5x16x16xf32> to vector<1x16x16xf32>
      %56 = vector.shape_cast %55 : vector<1x16x16xf32> to vector<16x16xf32>
      %cst_17 = arith.constant dense<0.000000e+00> : vector<80x16xf32>
      %57 = tpu.matmul %54, %56, %cst_17 {dimension_numbers = #tpu.dot_dimension_numbers<[1], [0], [0], [1], [0, 0, 1, 1], [], []>} : vector<80x16xf32>, vector<16x16xf32>, vector<80x16xf32> -> vector<80x16xf32>
      %58 = vector.extract_strided_slice %57 {offsets = [0, 0], sizes = [16, 16], strides = [1, 1]} : vector<80x16xf32> to vector<16x16xf32>
      %59 = vector.extract_strided_slice %57 {offsets = [16, 0], sizes = [16, 16], strides = [1, 1]} : vector<80x16xf32> to vector<16x16xf32>
      %60 = vector.extract_strided_slice %57 {offsets = [32, 0], sizes = [16, 16], strides = [1, 1]} : vector<80x16xf32> to vector<16x16xf32>
      %61 = vector.extract_strided_slice %57 {offsets = [48, 0], sizes = [16, 16], strides = [1, 1]} : vector<80x16xf32> to vector<16x16xf32>
      %62 = vector.extract_strided_slice %57 {offsets = [64, 0], sizes = [16, 16], strides = [1, 1]} : vector<80x16xf32> to vector<16x16xf32>
      %63 = arith.mulf %58, %58 : vector<16x16xf32>
      %64 = arith.mulf %59, %59 : vector<16x16xf32>
      %65 = arith.mulf %58, %59 : vector<16x16xf32>
      %66 = arith.subf %60, %63 : vector<16x16xf32>
      %67 = arith.subf %61, %64 : vector<16x16xf32>
      %68 = arith.subf %62, %65 : vector<16x16xf32>
      %cst_18 = arith.constant 2.000000e+00 : f32
      %69 = vector.broadcast %cst_18 : f32 to vector<16x16xf32>
      %70 = arith.mulf %69, %68 : vector<16x16xf32>
      %cst_19 = arith.constant 8.99999984E-4 : f32
      %71 = vector.broadcast %cst_19 : f32 to vector<16x16xf32>
      %72 = arith.addf %70, %71 : vector<16x16xf32>
      %73 = arith.addf %66, %67 : vector<16x16xf32>
      %cst_20 = arith.constant 8.99999984E-4 : f32
      %74 = vector.broadcast %cst_20 : f32 to vector<16x16xf32>
      %75 = arith.addf %73, %74 : vector<16x16xf32>
      %76 = arith.divf %72, %75 : vector<16x16xf32>
      %77 = arith.mulf %48, %76 : vector<16x16xf32>
      %78 = vector.extract_strided_slice %20 {offsets = [32, 0], sizes = [16, 16], strides = [1, 1]} : vector<80x96xf32> to vector<16x16xf32>
      %79 = vector.extract_strided_slice %20 {offsets = [32, 16], sizes = [16, 16], strides = [1, 1]} : vector<80x96xf32> to vector<16x16xf32>
      %80 = vector.extract_strided_slice %20 {offsets = [32, 32], sizes = [16, 16], strides = [1, 1]} : vector<80x96xf32> to vector<16x16xf32>
      %81 = vector.extract_strided_slice %20 {offsets = [32, 48], sizes = [16, 16], strides = [1, 1]} : vector<80x96xf32> to vector<16x16xf32>
      %82 = vector.extract_strided_slice %20 {offsets = [32, 64], sizes = [16, 16], strides = [1, 1]} : vector<80x96xf32> to vector<16x16xf32>
      %83 = tpu.concatenate %78, %79, %80, %81, %82 in 0 : vector<16x16xf32>, vector<16x16xf32>, vector<16x16xf32>, vector<16x16xf32>, vector<16x16xf32> -> vector<80x16xf32>
      %84 = vector.extract_strided_slice %1 {offsets = [2, 0, 0], sizes = [1, 16, 16], strides = [1, 1, 1]} : vector<5x16x16xf32> to vector<1x16x16xf32>
      %85 = vector.shape_cast %84 : vector<1x16x16xf32> to vector<16x16xf32>
      %cst_21 = arith.constant dense<0.000000e+00> : vector<80x16xf32>
      %86 = tpu.matmul %83, %85, %cst_21 {dimension_numbers = #tpu.dot_dimension_numbers<[1], [0], [0], [1], [0, 0, 1, 1], [], []>} : vector<80x16xf32>, vector<16x16xf32>, vector<80x16xf32> -> vector<80x16xf32>
      %87 = vector.extract_strided_slice %86 {offsets = [0, 0], sizes = [16, 16], strides = [1, 1]} : vector<80x16xf32> to vector<16x16xf32>
      %88 = vector.extract_strided_slice %86 {offsets = [16, 0], sizes = [16, 16], strides = [1, 1]} : vector<80x16xf32> to vector<16x16xf32>
      %89 = vector.extract_strided_slice %86 {offsets = [32, 0], sizes = [16, 16], strides = [1, 1]} : vector<80x16xf32> to vector<16x16xf32>
      %90 = vector.extract_strided_slice %86 {offsets = [48, 0], sizes = [16, 16], strides = [1, 1]} : vector<80x16xf32> to vector<16x16xf32>
      %91 = vector.extract_strided_slice %86 {offsets = [64, 0], sizes = [16, 16], strides = [1, 1]} : vector<80x16xf32> to vector<16x16xf32>
      %92 = arith.mulf %87, %87 : vector<16x16xf32>
      %93 = arith.mulf %88, %88 : vector<16x16xf32>
      %94 = arith.mulf %87, %88 : vector<16x16xf32>
      %95 = arith.subf %89, %92 : vector<16x16xf32>
      %96 = arith.subf %90, %93 : vector<16x16xf32>
      %97 = arith.subf %91, %94 : vector<16x16xf32>
      %cst_22 = arith.constant 2.000000e+00 : f32
      %98 = vector.broadcast %cst_22 : f32 to vector<16x16xf32>
      %99 = arith.mulf %98, %97 : vector<16x16xf32>
      %cst_23 = arith.constant 8.99999984E-4 : f32
      %100 = vector.broadcast %cst_23 : f32 to vector<16x16xf32>
      %101 = arith.addf %99, %100 : vector<16x16xf32>
      %102 = arith.addf %95, %96 : vector<16x16xf32>
      %cst_24 = arith.constant 8.99999984E-4 : f32
      %103 = vector.broadcast %cst_24 : f32 to vector<16x16xf32>
      %104 = arith.addf %102, %103 : vector<16x16xf32>
      %105 = arith.divf %101, %104 : vector<16x16xf32>
      %106 = arith.mulf %77, %105 : vector<16x16xf32>
      %107 = vector.extract_strided_slice %20 {offsets = [48, 0], sizes = [16, 16], strides = [1, 1]} : vector<80x96xf32> to vector<16x16xf32>
      %108 = vector.extract_strided_slice %20 {offsets = [48, 16], sizes = [16, 16], strides = [1, 1]} : vector<80x96xf32> to vector<16x16xf32>
      %109 = vector.extract_strided_slice %20 {offsets = [48, 32], sizes = [16, 16], strides = [1, 1]} : vector<80x96xf32> to vector<16x16xf32>
      %110 = vector.extract_strided_slice %20 {offsets = [48, 48], sizes = [16, 16], strides = [1, 1]} : vector<80x96xf32> to vector<16x16xf32>
      %111 = vector.extract_strided_slice %20 {offsets = [48, 64], sizes = [16, 16], strides = [1, 1]} : vector<80x96xf32> to vector<16x16xf32>
      %112 = tpu.concatenate %107, %108, %109, %110, %111 in 0 : vector<16x16xf32>, vector<16x16xf32>, vector<16x16xf32>, vector<16x16xf32>, vector<16x16xf32> -> vector<80x16xf32>
      %113 = vector.extract_strided_slice %1 {offsets = [3, 0, 0], sizes = [1, 16, 16], strides = [1, 1, 1]} : vector<5x16x16xf32> to vector<1x16x16xf32>
      %114 = vector.shape_cast %113 : vector<1x16x16xf32> to vector<16x16xf32>
      %cst_25 = arith.constant dense<0.000000e+00> : vector<80x16xf32>
      %115 = tpu.matmul %112, %114, %cst_25 {dimension_numbers = #tpu.dot_dimension_numbers<[1], [0], [0], [1], [0, 0, 1, 1], [], []>} : vector<80x16xf32>, vector<16x16xf32>, vector<80x16xf32> -> vector<80x16xf32>
      %116 = vector.extract_strided_slice %115 {offsets = [0, 0], sizes = [16, 16], strides = [1, 1]} : vector<80x16xf32> to vector<16x16xf32>
      %117 = vector.extract_strided_slice %115 {offsets = [16, 0], sizes = [16, 16], strides = [1, 1]} : vector<80x16xf32> to vector<16x16xf32>
      %118 = vector.extract_strided_slice %115 {offsets = [32, 0], sizes = [16, 16], strides = [1, 1]} : vector<80x16xf32> to vector<16x16xf32>
      %119 = vector.extract_strided_slice %115 {offsets = [48, 0], sizes = [16, 16], strides = [1, 1]} : vector<80x16xf32> to vector<16x16xf32>
      %120 = vector.extract_strided_slice %115 {offsets = [64, 0], sizes = [16, 16], strides = [1, 1]} : vector<80x16xf32> to vector<16x16xf32>
      %121 = arith.mulf %116, %116 : vector<16x16xf32>
      %122 = arith.mulf %117, %117 : vector<16x16xf32>
      %123 = arith.mulf %116, %117 : vector<16x16xf32>
      %124 = arith.subf %118, %121 : vector<16x16xf32>
      %125 = arith.subf %119, %122 : vector<16x16xf32>
      %126 = arith.subf %120, %123 : vector<16x16xf32>
      %cst_26 = arith.constant 2.000000e+00 : f32
      %127 = vector.broadcast %cst_26 : f32 to vector<16x16xf32>
      %128 = arith.mulf %127, %126 : vector<16x16xf32>
      %cst_27 = arith.constant 8.99999984E-4 : f32
      %129 = vector.broadcast %cst_27 : f32 to vector<16x16xf32>
      %130 = arith.addf %128, %129 : vector<16x16xf32>
      %131 = arith.addf %124, %125 : vector<16x16xf32>
      %cst_28 = arith.constant 8.99999984E-4 : f32
      %132 = vector.broadcast %cst_28 : f32 to vector<16x16xf32>
      %133 = arith.addf %131, %132 : vector<16x16xf32>
      %134 = arith.divf %130, %133 : vector<16x16xf32>
      %135 = arith.mulf %106, %134 : vector<16x16xf32>
      %136 = vector.extract_strided_slice %20 {offsets = [64, 0], sizes = [16, 16], strides = [1, 1]} : vector<80x96xf32> to vector<16x16xf32>
      %137 = vector.extract_strided_slice %20 {offsets = [64, 16], sizes = [16, 16], strides = [1, 1]} : vector<80x96xf32> to vector<16x16xf32>
      %138 = vector.extract_strided_slice %20 {offsets = [64, 32], sizes = [16, 16], strides = [1, 1]} : vector<80x96xf32> to vector<16x16xf32>
      %139 = vector.extract_strided_slice %20 {offsets = [64, 48], sizes = [16, 16], strides = [1, 1]} : vector<80x96xf32> to vector<16x16xf32>
      %140 = vector.extract_strided_slice %20 {offsets = [64, 64], sizes = [16, 16], strides = [1, 1]} : vector<80x96xf32> to vector<16x16xf32>
      %141 = vector.extract_strided_slice %20 {offsets = [64, 80], sizes = [16, 16], strides = [1, 1]} : vector<80x96xf32> to vector<16x16xf32>
      %142 = tpu.concatenate %136, %137, %138, %139, %140, %141 in 0 : vector<16x16xf32>, vector<16x16xf32>, vector<16x16xf32>, vector<16x16xf32>, vector<16x16xf32>, vector<16x16xf32> -> vector<96x16xf32>
      %143 = vector.extract_strided_slice %1 {offsets = [4, 0, 0], sizes = [1, 16, 16], strides = [1, 1, 1]} : vector<5x16x16xf32> to vector<1x16x16xf32>
      %144 = vector.shape_cast %143 : vector<1x16x16xf32> to vector<16x16xf32>
      %cst_29 = arith.constant dense<0.000000e+00> : vector<96x16xf32>
      %145 = tpu.matmul %142, %144, %cst_29 {dimension_numbers = #tpu.dot_dimension_numbers<[1], [0], [0], [1], [0, 0, 1, 1], [], []>} : vector<96x16xf32>, vector<16x16xf32>, vector<96x16xf32> -> vector<96x16xf32>
      %146 = vector.extract_strided_slice %145 {offsets = [0, 0], sizes = [16, 16], strides = [1, 1]} : vector<96x16xf32> to vector<16x16xf32>
      %147 = vector.extract_strided_slice %145 {offsets = [16, 0], sizes = [16, 16], strides = [1, 1]} : vector<96x16xf32> to vector<16x16xf32>
      %148 = vector.extract_strided_slice %145 {offsets = [32, 0], sizes = [16, 16], strides = [1, 1]} : vector<96x16xf32> to vector<16x16xf32>
      %149 = vector.extract_strided_slice %145 {offsets = [48, 0], sizes = [16, 16], strides = [1, 1]} : vector<96x16xf32> to vector<16x16xf32>
      %150 = vector.extract_strided_slice %145 {offsets = [64, 0], sizes = [16, 16], strides = [1, 1]} : vector<96x16xf32> to vector<16x16xf32>
      %151 = arith.mulf %146, %146 : vector<16x16xf32>
      %152 = arith.mulf %147, %147 : vector<16x16xf32>
      %153 = arith.mulf %146, %147 : vector<16x16xf32>
      %154 = arith.subf %148, %151 : vector<16x16xf32>
      %155 = arith.subf %149, %152 : vector<16x16xf32>
      %156 = arith.subf %150, %153 : vector<16x16xf32>
      %cst_30 = arith.constant 2.000000e+00 : f32
      %157 = vector.broadcast %cst_30 : f32 to vector<16x16xf32>
      %158 = arith.mulf %157, %156 : vector<16x16xf32>
      %cst_31 = arith.constant 8.99999984E-4 : f32
      %159 = vector.broadcast %cst_31 : f32 to vector<16x16xf32>
      %160 = arith.addf %158, %159 : vector<16x16xf32>
      %161 = arith.addf %154, %155 : vector<16x16xf32>
      %cst_32 = arith.constant 8.99999984E-4 : f32
      %162 = vector.broadcast %cst_32 : f32 to vector<16x16xf32>
      %163 = arith.addf %161, %162 : vector<16x16xf32>
      %164 = arith.divf %160, %163 : vector<16x16xf32>
      %165 = arith.mulf %135, %164 : vector<16x16xf32>
      %cst_33 = arith.constant 2.000000e+00 : f32
      %166 = vector.broadcast %cst_33 : f32 to vector<16x16xf32>
      %167 = arith.mulf %166, %153 : vector<16x16xf32>
      %cst_34 = arith.constant 9.99999974E-5 : f32
      %168 = vector.broadcast %cst_34 : f32 to vector<16x16xf32>
      %169 = arith.addf %167, %168 : vector<16x16xf32>
      %170 = arith.addf %151, %152 : vector<16x16xf32>
      %cst_35 = arith.constant 9.99999974E-5 : f32
      %171 = vector.broadcast %cst_35 : f32 to vector<16x16xf32>
      %172 = arith.addf %170, %171 : vector<16x16xf32>
      %173 = arith.divf %169, %172 : vector<16x16xf32>
      %174 = vector.extract_strided_slice %145 {offsets = [80, 0], sizes = [16, 16], strides = [1, 1]} : vector<96x16xf32> to vector<16x16xf32>
      %175 = arith.mulf %173, %165 : vector<16x16xf32>
      %cst_36 = arith.constant 1.000000e+00 : f32
      %176 = vector.broadcast %cst_36 : f32 to vector<16x16xf32>
      %177 = arith.subf %176, %175 : vector<16x16xf32>
      %cst_37 = arith.constant 2.500000e-02 : f32
      %178 = vector.broadcast %cst_37 : f32 to vector<16x16xf32>
      %179 = arith.mulf %178, %177 : vector<16x16xf32>
      %cst_38 = arith.constant 9.750000e-01 : f32
      %180 = vector.broadcast %cst_38 : f32 to vector<16x16xf32>
      %181 = arith.mulf %180, %174 : vector<16x16xf32>
      %cst_39 = arith.constant 1.000000e+00 : f32
      %182 = vector.broadcast %cst_39 : f32 to vector<16x16xf32>
      %183 = arith.divf %181, %182 : vector<16x16xf32>
      %184 = arith.addf %179, %183 : vector<16x16xf32>
      %cst_40 = arith.constant 2.000000e+01 : f32
      %185 = vector.broadcast %cst_40 : f32 to vector<16x16xf32>
      %186 = arith.mulf %185, %184 : vector<16x16xf32>
      %cst_41 = arith.constant dense<0.000000e+00> : vector<16xf32>
      %187 = vector.multi_reduction <add>, %186, %cst_41 [1] : vector<16x16xf32> to vector<16xf32>
      %188 = vector.shape_cast %187 : vector<16xf32> to vector<16x1xf32>
      %cst_42 = arith.constant dense<0.000000e+00> : vector<1xf32>
      %189 = vector.multi_reduction <add>, %188, %cst_42 [0] : vector<16x1xf32> to vector<1xf32>
      %190 = vector.shape_cast %189 : vector<1xf32> to vector<1x1xf32>
      %191 = arith.addf %arg7, %190 : vector<1x1xf32>
      scf.yield %191 : vector<1x1xf32>
    }
    %c2_i32_4 = arith.constant 2 : i32
    %c0_5 = arith.constant 0 : index
    %c0_6 = arith.constant 0 : index
    %c0_7 = arith.constant 0 : index
    %5 = vector.load %arg5[%c0_5, %c0_6, %c0_7] : memref<1x1x1xf32, #tpu.memory_space<vmem>>, vector<1x1x1xf32>
    %6 = vector.shape_cast %5 : vector<1x1x1xf32> to vector<1x1xf32>
    %7 = vector.shape_cast %4 : vector<1x1xf32> to vector<1x1x1xf32>
    tpu.vector_store %arg5[%c0_5, %c0_6, %c0_7], %7 {strides = array<i32>} : memref<1x1x1xf32, #tpu.memory_space<vmem>>, vector<1x1x1xf32>,
    return
  }
  func.func @transform_0(%arg0: i32) -> (i32, i32, i32) {
    %c0_i32 = arith.constant 0 : i32
    %c0_i32_0 = arith.constant 0 : i32
    %c0_i32_1 = arith.constant 0 : i32
    return %arg0, %c0_i32, %c0_i32_0 : i32, i32, i32
  }
  func.func @transform_1(%arg0: i32) -> (i32, i32, i32) {
    %c0_i32 = arith.constant 0 : i32
    %c0_i32_0 = arith.constant 0 : i32
    %c0_i32_1 = arith.constant 0 : i32
    return %arg0, %c0_i32, %c0_i32_0 : i32, i32, i32
  }
  func.func @transform_2(%arg0: i32) -> (i32, i32) {
    %c0_i32 = arith.constant 0 : i32
    %c0_i32_0 = arith.constant 0 : i32
    %c0_i32_1 = arith.constant 0 : i32
    return %c0_i32, %c0_i32_0 : i32, i32
  }
  func.func @transform_3(%arg0: i32) -> (i32, i32, i32) {
    %c0_i32 = arith.constant 0 : i32
    %c0_i32_0 = arith.constant 0 : i32
    %c0_i32_1 = arith.constant 0 : i32
    %c0_i32_2 = arith.constant 0 : i32
    return %c0_i32, %c0_i32_0, %c0_i32_1 : i32, i32, i32
  }
  func.func @transform_4(%arg0: i32) -> (i32, i32, i32) {
    %c0_i32 = arith.constant 0 : i32
    %c0_i32_0 = arith.constant 0 : i32
    %c0_i32_1 = arith.constant 0 : i32
    return %arg0, %c0_i32, %c0_i32_0 : i32, i32, i32
  }
}

module attributes {stable_mosaic.version = 11 : i64} {
  func.func @_ms_ssim_l1_kernel(%arg0: i32, %arg1: memref<2x16x16xf32, #tpu.memory_space<vmem>>, %arg2: memref<2x16x16xf32, #tpu.memory_space<vmem>>, %arg3: memref<80x16xf32, #tpu.memory_space<vmem>>, %arg4: memref<5x16x16xf32, #tpu.memory_space<vmem>>, %arg5: memref<1x1x1xf32, #tpu.memory_space<vmem>>) attributes {dimension_semantics = [#tpu.dimension_semantics<parallel>], iteration_bounds = array<i64: 2>, scalar_prefetch = 0 : i64, scratch_operands = 0 : i64, tpu.core_type = #tpu.core_type<tc>, window_params = [{transform_indices = @transform_0, window_bounds = array<i64: 2, 16, 16>}, {transform_indices = @transform_1, window_bounds = array<i64: 2, 16, 16>}, {pipeline_mode = #tpu.pipeline_mode<synchronous>, transform_indices = @transform_2, window_bounds = array<i64: 80, 16>}, {pipeline_mode = #tpu.pipeline_mode<synchronous>, transform_indices = @transform_3, window_bounds = array<i64: 5, 16, 16>}, {transform_indices = @transform_4, window_bounds = array<i64: 1, 1, 1>}]} {
    %c0 = arith.constant 0 : index
    %c0_0 = arith.constant 0 : index
    %0 = vector.load %arg3[%c0, %c0_0] : memref<80x16xf32, #tpu.memory_space<vmem>>, vector<80x16xf32>
    %c0_1 = arith.constant 0 : index
    %c0_2 = arith.constant 0 : index
    %c0_3 = arith.constant 0 : index
    %1 = vector.load %arg4[%c0_1, %c0_2, %c0_3] : memref<5x16x16xf32, #tpu.memory_space<vmem>>, vector<5x16x16xf32>
    %cst = arith.constant 0.000000e+00 : f32
    %2 = vector.broadcast %cst : f32 to vector<1x1xf32>
    %c0_i32 = arith.constant 0 : i32
    %c2_i32 = arith.constant 2 : i32
    %3 = arith.addi %c0_i32, %c2_i32 : i32
    %c1_i32 = arith.constant 1 : i32
    %4 = scf.for %arg6 = %c0_i32 to %3 step %c1_i32 iter_args(%arg7 = %2) -> (vector<1x1xf32>)  : i32 {
      %8 = arith.index_cast %arg6 : i32 to index
      %c0_8 = arith.constant 0 : index
      %c0_9 = arith.constant 0 : index
      %9 = vector.load %arg1[%8, %c0_8, %c0_9] : memref<2x16x16xf32, #tpu.memory_space<vmem>>, vector<1x16x16xf32>
      %10 = vector.shape_cast %9 : vector<1x16x16xf32> to vector<16x16xf32>
      %11 = arith.index_cast %arg6 : i32 to index
      %c0_10 = arith.constant 0 : index
      %c0_11 = arith.constant 0 : index
      %12 = vector.load %arg2[%11, %c0_10, %c0_11] : memref<2x16x16xf32, #tpu.memory_space<vmem>>, vector<1x16x16xf32>
      %13 = vector.shape_cast %12 : vector<1x16x16xf32> to vector<16x16xf32>
      %14 = arith.mulf %10, %10 : vector<16x16xf32>
      %15 = arith.mulf %13, %13 : vector<16x16xf32>
      %16 = arith.mulf %10, %13 : vector<16x16xf32>
      %17 = arith.subf %10, %13 : vector<16x16xf32>
      %18 = math.absf %17 : vector<16x16xf32>
      %19 = tpu.concatenate %10, %13, %14, %15, %16, %18 in 1 : vector<16x16xf32>, vector<16x16xf32>, vector<16x16xf32>, vector<16x16xf32>, vector<16x16xf32>, vector<16x16xf32> -> vector<16x96xf32>
      %cst_12 = arith.constant dense<0.000000e+00> : vector<80x96xf32>
      %20 = tpu.matmul %0, %19, %cst_12 {dimension_numbers = #tpu.dot_dimension_numbers<[1], [0], [0], [1], [0, 0, 1, 1], [], []>} : vector<80x16xf32>, vector<16x96xf32>, vector<80x96xf32> -> vector<80x96xf32>
      %21 = vector.extract_strided_slice %20 {offsets = [0, 0], sizes = [16, 16], strides = [1, 1]} : vector<80x96xf32> to vector<16x16xf32>
      %22 = vector.extract_strided_slice %20 {offsets = [0, 16], sizes = [16, 16], strides = [1, 1]} : vector<80x96xf32> to vector<16x16xf32>
      %23 = vector.extract_strided_slice %20 {offsets = [0, 32], sizes = [16, 16], strides = [1, 1]} : vector<80x96xf32> to vector<16x16xf32>
      %24 = vector.extract_strided_slice %20 {offsets = [0, 48], sizes = [16, 16], strides = [1, 1]} : vector<80x96xf32> to vector<16x16xf32>
      %25 = vector.extract_strided_slice %20 {offsets = [0, 64], sizes = [16, 16], strides = [1, 1]} : vector<80x96xf32> to vector<16x16xf32>
      %26 = tpu.concatenate %21, %22, %23, %24, %25 in 0 : vector<16x16xf32>, vector<16x16xf32>, vector<16x16xf32>, vector<16x16xf32>, vector<16x16xf32> -> vector<80x16xf32>
      %27 = vector.extract_strided_slice %1 {offsets = [0, 0, 0], sizes = [1, 16, 16], strides = [1, 1, 1]} : vector<5x16x16xf32> to vector<1x16x16xf32>
      %28 = vector.shape_cast %27 : vector<1x16x16xf32> to vector<16x16xf32>
      %cst_13 = arith.constant dense<0.000000e+00> : vector<80x16xf32>
      %29 = tpu.matmul %26, %28, %cst_13 {dimension_numbers = #tpu.dot_dimension_numbers<[1], [0], [0], [1], [0, 0, 1, 1], [], []>} : vector<80x16xf32>, vector<16x16xf32>, vector<80x16xf32> -> vector<80x16xf32>
      %30 = vector.extract_strided_slice %29 {offsets = [0, 0], sizes = [16, 16], strides = [1, 1]} : vector<80x16xf32> to vector<16x16xf32>
      %31 = vector.extract_strided_slice %29 {offsets = [16, 0], sizes = [16, 16], strides = [1, 1]} : vector<80x16xf32> to vector<16x16xf32>
      %32 = vector.extract_strided_slice %29 {offsets = [32, 0], sizes = [16, 16], strides = [1, 1]} : vector<80x16xf32> to vector<16x16xf32>
      %33 = vector.extract_strided_slice %29 {offsets = [48, 0], sizes = [16, 16], strides = [1, 1]} : vector<80x16xf32> to vector<16x16xf32>
      %34 = vector.extract_strided_slice %29 {offsets = [64, 0], sizes = [16, 16], strides = [1, 1]} : vector<80x16xf32> to vector<16x16xf32>
      %35 = arith.mulf %30, %30 : vector<16x16xf32>
      %36 = arith.mulf %31, %31 : vector<16x16xf32>
      %37 = arith.mulf %30, %31 : vector<16x16xf32>
      %38 = arith.subf %32, %35 : vector<16x16xf32>
      %39 = arith.subf %33, %36 : vector<16x16xf32>
      %40 = arith.subf %34, %37 : vector<16x16xf32>
      %cst_14 = arith.constant 2.000000e+00 : f32
      %41 = vector.broadcast %cst_14 : f32 to vector<16x16xf32>
      %42 = arith.mulf %41, %40 : vector<16x16xf32>
      %cst_15 = arith.constant 8.99999984E-4 : f32
      %43 = vector.broadcast %cst_15 : f32 to vector<16x16xf32>
      %44 = arith.addf %42, %43 : vector<16x16xf32>
      %45 = arith.addf %38, %39 : vector<16x16xf32>
      %cst_16 = arith.constant 8.99999984E-4 : f32
      %46 = vector.broadcast %cst_16 : f32 to vector<16x16xf32>
      %47 = arith.addf %45, %46 : vector<16x16xf32>
      %48 = arith.divf %44, %47 : vector<16x16xf32>
      %49 = vector.extract_strided_slice %20 {offsets = [16, 0], sizes = [16, 16], strides = [1, 1]} : vector<80x96xf32> to vector<16x16xf32>
      %50 = vector.extract_strided_slice %20 {offsets = [16, 16], sizes = [16, 16], strides = [1, 1]} : vector<80x96xf32> to vector<16x16xf32>
      %51 = vector.extract_strided_slice %20 {offsets = [16, 32], sizes = [16, 16], strides = [1, 1]} : vector<80x96xf32> to vector<16x16xf32>
      %52 = vector.extract_strided_slice %20 {offsets = [16, 48], sizes = [16, 16], strides = [1, 1]} : vector<80x96xf32> to vector<16x16xf32>
      %53 = vector.extract_strided_slice %20 {offsets = [16, 64], sizes = [16, 16], strides = [1, 1]} : vector<80x96xf32> to vector<16x16xf32>
      %54 = tpu.concatenate %49, %50, %51, %52, %53 in 0 : vector<16x16xf32>, vector<16x16xf32>, vector<16x16xf32>, vector<16x16xf32>, vector<16x16xf32> -> vector<80x16xf32>
      %55 = vector.extract_strided_slice %1 {offsets = [1, 0, 0], sizes = [1, 16, 16], strides = [1, 1, 1]} : vector<5x16x16xf32> to vector<1x16x16xf32>
      %56 = vector.shape_cast %55 : vector<1x16x16xf32> to vector<16x16xf32>
      %cst_17 = arith.constant dense<0.000000e+00> : vector<80x16xf32>
      %57 = tpu.matmul %54, %56, %cst_17 {dimension_numbers = #tpu.dot_dimension_numbers<[1], [0], [0], [1], [0, 0, 1, 1], [], []>} : vector<80x16xf32>, vector<16x16xf32>, vector<80x16xf32> -> vector<80x16xf32>
      %58 = vector.extract_strided_slice %57 {offsets = [0, 0], sizes = [16, 16], strides = [1, 1]} : vector<80x16xf32> to vector<16x16xf32>
      %59 = vector.extract_strided_slice %57 {offsets = [16, 0], sizes = [16, 16], strides = [1, 1]} : vector<80x16xf32> to vector<16x16xf32>
      %60 = vector.extract_strided_slice %57 {offsets = [32, 0], sizes = [16, 16], strides = [1, 1]} : vector<80x16xf32> to vector<16x16xf32>
      %61 = vector.extract_strided_slice %57 {offsets = [48, 0], sizes = [16, 16], strides = [1, 1]} : vector<80x16xf32> to vector<16x16xf32>
      %62 = vector.extract_strided_slice %57 {offsets = [64, 0], sizes = [16, 16], strides = [1, 1]} : vector<80x16xf32> to vector<16x16xf32>
      %63 = arith.mulf %58, %58 : vector<16x16xf32>
      %64 = arith.mulf %59, %59 : vector<16x16xf32>
      %65 = arith.mulf %58, %59 : vector<16x16xf32>
      %66 = arith.subf %60, %63 : vector<16x16xf32>
      %67 = arith.subf %61, %64 : vector<16x16xf32>
      %68 = arith.subf %62, %65 : vector<16x16xf32>
      %cst_18 = arith.constant 2.000000e+00 : f32
      %69 = vector.broadcast %cst_18 : f32 to vector<16x16xf32>
      %70 = arith.mulf %69, %68 : vector<16x16xf32>
      %cst_19 = arith.constant 8.99999984E-4 : f32
      %71 = vector.broadcast %cst_19 : f32 to vector<16x16xf32>
      %72 = arith.addf %70, %71 : vector<16x16xf32>
      %73 = arith.addf %66, %67 : vector<16x16xf32>
      %cst_20 = arith.constant 8.99999984E-4 : f32
      %74 = vector.broadcast %cst_20 : f32 to vector<16x16xf32>
      %75 = arith.addf %73, %74 : vector<16x16xf32>
      %76 = arith.divf %72, %75 : vector<16x16xf32>
      %77 = arith.mulf %48, %76 : vector<16x16xf32>
      %78 = vector.extract_strided_slice %20 {offsets = [32, 0], sizes = [16, 16], strides = [1, 1]} : vector<80x96xf32> to vector<16x16xf32>
      %79 = vector.extract_strided_slice %20 {offsets = [32, 16], sizes = [16, 16], strides = [1, 1]} : vector<80x96xf32> to vector<16x16xf32>
      %80 = vector.extract_strided_slice %20 {offsets = [32, 32], sizes = [16, 16], strides = [1, 1]} : vector<80x96xf32> to vector<16x16xf32>
      %81 = vector.extract_strided_slice %20 {offsets = [32, 48], sizes = [16, 16], strides = [1, 1]} : vector<80x96xf32> to vector<16x16xf32>
      %82 = vector.extract_strided_slice %20 {offsets = [32, 64], sizes = [16, 16], strides = [1, 1]} : vector<80x96xf32> to vector<16x16xf32>
      %83 = tpu.concatenate %78, %79, %80, %81, %82 in 0 : vector<16x16xf32>, vector<16x16xf32>, vector<16x16xf32>, vector<16x16xf32>, vector<16x16xf32> -> vector<80x16xf32>
      %84 = vector.extract_strided_slice %1 {offsets = [2, 0, 0], sizes = [1, 16, 16], strides = [1, 1, 1]} : vector<5x16x16xf32> to vector<1x16x16xf32>
      %85 = vector.shape_cast %84 : vector<1x16x16xf32> to vector<16x16xf32>
      %cst_21 = arith.constant dense<0.000000e+00> : vector<80x16xf32>
      %86 = tpu.matmul %83, %85, %cst_21 {dimension_numbers = #tpu.dot_dimension_numbers<[1], [0], [0], [1], [0, 0, 1, 1], [], []>} : vector<80x16xf32>, vector<16x16xf32>, vector<80x16xf32> -> vector<80x16xf32>
      %87 = vector.extract_strided_slice %86 {offsets = [0, 0], sizes = [16, 16], strides = [1, 1]} : vector<80x16xf32> to vector<16x16xf32>
      %88 = vector.extract_strided_slice %86 {offsets = [16, 0], sizes = [16, 16], strides = [1, 1]} : vector<80x16xf32> to vector<16x16xf32>
      %89 = vector.extract_strided_slice %86 {offsets = [32, 0], sizes = [16, 16], strides = [1, 1]} : vector<80x16xf32> to vector<16x16xf32>
      %90 = vector.extract_strided_slice %86 {offsets = [48, 0], sizes = [16, 16], strides = [1, 1]} : vector<80x16xf32> to vector<16x16xf32>
      %91 = vector.extract_strided_slice %86 {offsets = [64, 0], sizes = [16, 16], strides = [1, 1]} : vector<80x16xf32> to vector<16x16xf32>
      %92 = arith.mulf %87, %87 : vector<16x16xf32>
      %93 = arith.mulf %88, %88 : vector<16x16xf32>
      %94 = arith.mulf %87, %88 : vector<16x16xf32>
      %95 = arith.subf %89, %92 : vector<16x16xf32>
      %96 = arith.subf %90, %93 : vector<16x16xf32>
      %97 = arith.subf %91, %94 : vector<16x16xf32>
      %cst_22 = arith.constant 2.000000e+00 : f32
      %98 = vector.broadcast %cst_22 : f32 to vector<16x16xf32>
      %99 = arith.mulf %98, %97 : vector<16x16xf32>
      %cst_23 = arith.constant 8.99999984E-4 : f32
      %100 = vector.broadcast %cst_23 : f32 to vector<16x16xf32>
      %101 = arith.addf %99, %100 : vector<16x16xf32>
      %102 = arith.addf %95, %96 : vector<16x16xf32>
      %cst_24 = arith.constant 8.99999984E-4 : f32
      %103 = vector.broadcast %cst_24 : f32 to vector<16x16xf32>
      %104 = arith.addf %102, %103 : vector<16x16xf32>
      %105 = arith.divf %101, %104 : vector<16x16xf32>
      %106 = arith.mulf %77, %105 : vector<16x16xf32>
      %107 = vector.extract_strided_slice %20 {offsets = [48, 0], sizes = [16, 16], strides = [1, 1]} : vector<80x96xf32> to vector<16x16xf32>
      %108 = vector.extract_strided_slice %20 {offsets = [48, 16], sizes = [16, 16], strides = [1, 1]} : vector<80x96xf32> to vector<16x16xf32>
      %109 = vector.extract_strided_slice %20 {offsets = [48, 32], sizes = [16, 16], strides = [1, 1]} : vector<80x96xf32> to vector<16x16xf32>
      %110 = vector.extract_strided_slice %20 {offsets = [48, 48], sizes = [16, 16], strides = [1, 1]} : vector<80x96xf32> to vector<16x16xf32>
      %111 = vector.extract_strided_slice %20 {offsets = [48, 64], sizes = [16, 16], strides = [1, 1]} : vector<80x96xf32> to vector<16x16xf32>
      %112 = tpu.concatenate %107, %108, %109, %110, %111 in 0 : vector<16x16xf32>, vector<16x16xf32>, vector<16x16xf32>, vector<16x16xf32>, vector<16x16xf32> -> vector<80x16xf32>
      %113 = vector.extract_strided_slice %1 {offsets = [3, 0, 0], sizes = [1, 16, 16], strides = [1, 1, 1]} : vector<5x16x16xf32> to vector<1x16x16xf32>
      %114 = vector.shape_cast %113 : vector<1x16x16xf32> to vector<16x16xf32>
      %cst_25 = arith.constant dense<0.000000e+00> : vector<80x16xf32>
      %115 = tpu.matmul %112, %114, %cst_25 {dimension_numbers = #tpu.dot_dimension_numbers<[1], [0], [0], [1], [0, 0, 1, 1], [], []>} : vector<80x16xf32>, vector<16x16xf32>, vector<80x16xf32> -> vector<80x16xf32>
      %116 = vector.extract_strided_slice %115 {offsets = [0, 0], sizes = [16, 16], strides = [1, 1]} : vector<80x16xf32> to vector<16x16xf32>
      %117 = vector.extract_strided_slice %115 {offsets = [16, 0], sizes = [16, 16], strides = [1, 1]} : vector<80x16xf32> to vector<16x16xf32>
      %118 = vector.extract_strided_slice %115 {offsets = [32, 0], sizes = [16, 16], strides = [1, 1]} : vector<80x16xf32> to vector<16x16xf32>
      %119 = vector.extract_strided_slice %115 {offsets = [48, 0], sizes = [16, 16], strides = [1, 1]} : vector<80x16xf32> to vector<16x16xf32>
      %120 = vector.extract_strided_slice %115 {offsets = [64, 0], sizes = [16, 16], strides = [1, 1]} : vector<80x16xf32> to vector<16x16xf32>
      %121 = arith.mulf %116, %116 : vector<16x16xf32>
      %122 = arith.mulf %117, %117 : vector<16x16xf32>
      %123 = arith.mulf %116, %117 : vector<16x16xf32>
      %124 = arith.subf %118, %121 : vector<16x16xf32>
      %125 = arith.subf %119, %122 : vector<16x16xf32>
      %126 = arith.subf %120, %123 : vector<16x16xf32>
      %cst_26 = arith.constant 2.000000e+00 : f32
      %127 = vector.broadcast %cst_26 : f32 to vector<16x16xf32>
      %128 = arith.mulf %127, %126 : vector<16x16xf32>
      %cst_27 = arith.constant 8.99999984E-4 : f32
      %129 = vector.broadcast %cst_27 : f32 to vector<16x16xf32>
      %130 = arith.addf %128, %129 : vector<16x16xf32>
      %131 = arith.addf %124, %125 : vector<16x16xf32>
      %cst_28 = arith.constant 8.99999984E-4 : f32
      %132 = vector.broadcast %cst_28 : f32 to vector<16x16xf32>
      %133 = arith.addf %131, %132 : vector<16x16xf32>
      %134 = arith.divf %130, %133 : vector<16x16xf32>
      %135 = arith.mulf %106, %134 : vector<16x16xf32>
      %136 = vector.extract_strided_slice %20 {offsets = [64, 0], sizes = [16, 16], strides = [1, 1]} : vector<80x96xf32> to vector<16x16xf32>
      %137 = vector.extract_strided_slice %20 {offsets = [64, 16], sizes = [16, 16], strides = [1, 1]} : vector<80x96xf32> to vector<16x16xf32>
      %138 = vector.extract_strided_slice %20 {offsets = [64, 32], sizes = [16, 16], strides = [1, 1]} : vector<80x96xf32> to vector<16x16xf32>
      %139 = vector.extract_strided_slice %20 {offsets = [64, 48], sizes = [16, 16], strides = [1, 1]} : vector<80x96xf32> to vector<16x16xf32>
      %140 = vector.extract_strided_slice %20 {offsets = [64, 64], sizes = [16, 16], strides = [1, 1]} : vector<80x96xf32> to vector<16x16xf32>
      %141 = vector.extract_strided_slice %20 {offsets = [64, 80], sizes = [16, 16], strides = [1, 1]} : vector<80x96xf32> to vector<16x16xf32>
      %142 = tpu.concatenate %136, %137, %138, %139, %140, %141 in 0 : vector<16x16xf32>, vector<16x16xf32>, vector<16x16xf32>, vector<16x16xf32>, vector<16x16xf32>, vector<16x16xf32> -> vector<96x16xf32>
      %143 = vector.extract_strided_slice %1 {offsets = [4, 0, 0], sizes = [1, 16, 16], strides = [1, 1, 1]} : vector<5x16x16xf32> to vector<1x16x16xf32>
      %144 = vector.shape_cast %143 : vector<1x16x16xf32> to vector<16x16xf32>
      %cst_29 = arith.constant dense<0.000000e+00> : vector<96x16xf32>
      %145 = tpu.matmul %142, %144, %cst_29 {dimension_numbers = #tpu.dot_dimension_numbers<[1], [0], [0], [1], [0, 0, 1, 1], [], []>} : vector<96x16xf32>, vector<16x16xf32>, vector<96x16xf32> -> vector<96x16xf32>
      %146 = vector.extract_strided_slice %145 {offsets = [0, 0], sizes = [16, 16], strides = [1, 1]} : vector<96x16xf32> to vector<16x16xf32>
      %147 = vector.extract_strided_slice %145 {offsets = [16, 0], sizes = [16, 16], strides = [1, 1]} : vector<96x16xf32> to vector<16x16xf32>
      %148 = vector.extract_strided_slice %145 {offsets = [32, 0], sizes = [16, 16], strides = [1, 1]} : vector<96x16xf32> to vector<16x16xf32>
      %149 = vector.extract_strided_slice %145 {offsets = [48, 0], sizes = [16, 16], strides = [1, 1]} : vector<96x16xf32> to vector<16x16xf32>
      %150 = vector.extract_strided_slice %145 {offsets = [64, 0], sizes = [16, 16], strides = [1, 1]} : vector<96x16xf32> to vector<16x16xf32>
      %151 = arith.mulf %146, %146 : vector<16x16xf32>
      %152 = arith.mulf %147, %147 : vector<16x16xf32>
      %153 = arith.mulf %146, %147 : vector<16x16xf32>
      %154 = arith.subf %148, %151 : vector<16x16xf32>
      %155 = arith.subf %149, %152 : vector<16x16xf32>
      %156 = arith.subf %150, %153 : vector<16x16xf32>
      %cst_30 = arith.constant 2.000000e+00 : f32
      %157 = vector.broadcast %cst_30 : f32 to vector<16x16xf32>
      %158 = arith.mulf %157, %156 : vector<16x16xf32>
      %cst_31 = arith.constant 8.99999984E-4 : f32
      %159 = vector.broadcast %cst_31 : f32 to vector<16x16xf32>
      %160 = arith.addf %158, %159 : vector<16x16xf32>
      %161 = arith.addf %154, %155 : vector<16x16xf32>
      %cst_32 = arith.constant 8.99999984E-4 : f32
      %162 = vector.broadcast %cst_32 : f32 to vector<16x16xf32>
      %163 = arith.addf %161, %162 : vector<16x16xf32>
      %164 = arith.divf %160, %163 : vector<16x16xf32>
      %165 = arith.mulf %135, %164 : vector<16x16xf32>
      %cst_33 = arith.constant 2.000000e+00 : f32
      %166 = vector.broadcast %cst_33 : f32 to vector<16x16xf32>
      %167 = arith.mulf %166, %153 : vector<16x16xf32>
      %cst_34 = arith.constant 9.99999974E-5 : f32
      %168 = vector.broadcast %cst_34 : f32 to vector<16x16xf32>
      %169 = arith.addf %167, %168 : vector<16x16xf32>
      %170 = arith.addf %151, %152 : vector<16x16xf32>
      %cst_35 = arith.constant 9.99999974E-5 : f32
      %171 = vector.broadcast %cst_35 : f32 to vector<16x16xf32>
      %172 = arith.addf %170, %171 : vector<16x16xf32>
      %173 = arith.divf %169, %172 : vector<16x16xf32>
      %174 = vector.extract_strided_slice %145 {offsets = [80, 0], sizes = [16, 16], strides = [1, 1]} : vector<96x16xf32> to vector<16x16xf32>
      %175 = arith.mulf %173, %165 : vector<16x16xf32>
      %cst_36 = arith.constant 1.000000e+00 : f32
      %176 = vector.broadcast %cst_36 : f32 to vector<16x16xf32>
      %177 = arith.subf %176, %175 : vector<16x16xf32>
      %cst_37 = arith.constant 2.500000e-02 : f32
      %178 = vector.broadcast %cst_37 : f32 to vector<16x16xf32>
      %179 = arith.mulf %178, %177 : vector<16x16xf32>
      %cst_38 = arith.constant 9.750000e-01 : f32
      %180 = vector.broadcast %cst_38 : f32 to vector<16x16xf32>
      %181 = arith.mulf %180, %174 : vector<16x16xf32>
      %cst_39 = arith.constant 1.000000e+00 : f32
      %182 = vector.broadcast %cst_39 : f32 to vector<16x16xf32>
      %183 = arith.divf %181, %182 : vector<16x16xf32>
      %184 = arith.addf %179, %183 : vector<16x16xf32>
      %cst_40 = arith.constant 2.000000e+01 : f32
      %185 = vector.broadcast %cst_40 : f32 to vector<16x16xf32>
      %186 = arith.mulf %185, %184 : vector<16x16xf32>
      %cst_41 = arith.constant dense<0.000000e+00> : vector<16xf32>
      %187 = vector.multi_reduction <add>, %186, %cst_41 [1] : vector<16x16xf32> to vector<16xf32>
      %188 = vector.shape_cast %187 : vector<16xf32> to vector<16x1xf32>
      %cst_42 = arith.constant dense<0.000000e+00> : vector<1xf32>
      %189 = vector.multi_reduction <add>, %188, %cst_42 [0] : vector<16x1xf32> to vector<1xf32>
      %190 = vector.shape_cast %189 : vector<1xf32> to vector<1x1xf32>
      %191 = arith.addf %arg7, %190 : vector<1x1xf32>
      scf.yield %191 : vector<1x1xf32>
    }
    %c2_i32_4 = arith.constant 2 : i32
    %c0_5 = arith.constant 0 : index
    %c0_6 = arith.constant 0 : index
    %c0_7 = arith.constant 0 : index
    %5 = vector.load %arg5[%c0_5, %c0_6, %c0_7] : memref<1x1x1xf32, #tpu.memory_space<vmem>>, vector<1x1x1xf32>
    %6 = vector.shape_cast %5 : vector<1x1x1xf32> to vector<1x1xf32>
    %7 = vector.shape_cast %4 : vector<1x1xf32> to vector<1x1x1xf32>
    tpu.vector_store %arg5[%c0_5, %c0_6, %c0_7], %7 {strides = array<i32>} : memref<1x1x1xf32, #tpu.memory_space<vmem>>, vector<1x1x1xf32>,
    return
  }
  func.func @transform_0(%arg0: i32) -> (i32, i32, i32) {
    %c0_i32 = arith.constant 0 : i32
    %c0_i32_0 = arith.constant 0 : i32
    %c0_i32_1 = arith.constant 0 : i32
    return %arg0, %c0_i32, %c0_i32_0 : i32, i32, i32
  }
  func.func @transform_1(%arg0: i32) -> (i32, i32, i32) {
    %c0_i32 = arith.constant 0 : i32
    %c0_i32_0 = arith.constant 0 : i32
    %c0_i32_1 = arith.constant 0 : i32
    return %arg0, %c0_i32, %c0_i32_0 : i32, i32, i32
  }
  func.func @transform_2(%arg0: i32) -> (i32, i32) {
    %c0_i32 = arith.constant 0 : i32
    %c0_i32_0 = arith.constant 0 : i32
    %c0_i32_1 = arith.constant 0 : i32
    return %c0_i32, %c0_i32_0 : i32, i32
  }
  func.func @transform_3(%arg0: i32) -> (i32, i32, i32) {
    %c0_i32 = arith.constant 0 : i32
    %c0_i32_0 = arith.constant 0 : i32
    %c0_i32_1 = arith.constant 0 : i32
    %c0_i32_2 = arith.constant 0 : i32
    return %c0_i32, %c0_i32_0, %c0_i32_1 : i32, i32, i32
  }
  func.func @transform_4(%arg0: i32) -> (i32, i32, i32) {
    %c0_i32 = arith.constant 0 : i32
    %c0_i32_0 = arith.constant 0 : i32
    %c0_i32_1 = arith.constant 0 : i32
    return %arg0, %c0_i32, %c0_i32_0 : i32, i32, i32
  }
}

</mosaic_0001>

<bundles_post_ra>
// kernel: ms_ssim_l1_loss_pallas.1
= control target key start
LH: loop header
LB: loop body
LE: loop exit
PB: predicated region body
PF: predicated region fallthrough
CT: control target
= control target key end

     0   :  { %s1919_s15 = smov 0   ;;  %s2253_s0 = inlined_call_operand.vmem [shape: f32[4,16,16], index: 0, kind: input, shape index: {}]   ;;  %s2254_s1 = inlined_call_operand.vmem [shape: f32[4,16,16], index: 1, kind: input, shape index: {}]   ;;  %s2255_s2 = inlined_call_operand.vmem [shape: f32[80,16], index: 2, kind: input, shape index: {}]   ;;  %s2256_s3 = inlined_call_operand.vmem [shape: f32[5,16,16], index: 3, kind: input, shape index: {}]   ;;  %s2257_s4 = inlined_call_operand.vmem [shape: f32[2,1,1], index: 4, kind: output, shape index: {}]  }
   0x1 LB: > { %s1490_s16 = sadd.s32 4294967295, %s1877_s15   ;;  %p1494_p0 = scmp.ge.s32.totalorder %s1877_s15, 1  ;;  %s1877_s15 = sphi %s1919_s15, %s14_s15  }
   0x2   : > { %p176_p1 = scmp.lt.s32.totalorder %s1877_s15, 3 }
   0x4   : > { %p177_p2 = pnand %p1494_p0, %p176_p1 }
   0x5   : > { %s1495_s17 = sshll.u32 (!%p177_p2), %s1490_s16, 1  ;;  %p221_p3 = scmp.lt.s32.totalorder (!%p177_p2), %s1490_s16, 1  ;;  %v1930_v0 = vld [vmem:[%s2255_s2] sm:$0xff] (!%p177_p2)  ;;  %v1935_v1 = vld [vmem:[%s2255_s2 + $0x8] sm:$0xff] (!%p177_p2)  ;;  %v1940_v2 = vld [vmem:[%s2255_s2 + $0x10] sm:$0xff] (!%p177_p2)  ;;  %v2043_v20 = vmov (!%p177_p2), 0.0  }
   0x6   : > { %180 = sbr.rel (%p177_p2) target bundleno = 954 (0x3ba), region = 36  ;;  %p208_p4 = scmp.lt.s32.totalorder (!%p177_p2), %s1495_s17, 3  ;;  %v1945_v3 = vld [vmem:[%s2255_s2 + $0x18] sm:$0xff] (!%p177_p2)  ;;  %v1950_v4 = vld [vmem:[%s2255_s2 + $0x20] sm:$0xff] (!%p177_p2)  ;;  %v1955_v5 = vld [vmem:[%s2255_s2 + $0x28] sm:$0xff] (!%p177_p2) }
   0x7   : > { %v1962_v6 = vld [vmem:[%s2255_s2 + $0x30] sm:$0xff] (!%p177_p2)  ;;  %v1967_v7 = vld [vmem:[%s2255_s2 + $0x38] sm:$0xff] (!%p177_p2)  ;;  %v1972_v8 = vld [vmem:[%s2255_s2 + $0x40] sm:$0xff] (!%p177_p2)  ;;  %s2045_s22 = smov (!%p177_p2), 0  }
   0x8   : > { %v1977_v9 = vld [vmem:[%s2255_s2 + $0x48] sm:$0xff] (!%p177_p2)  ;;  %v1982_v10 = vld [vmem:[%s2256_s3] sm:$0xff] (!%p177_p2)  ;;  %v1996_v12 = vld [vmem:[%s2256_s3 + $0x10] sm:$0xff] (!%p177_p2) }
   0x9   : > { %v1987_v11 = vld [vmem:[%s2256_s3 + $0x8] sm:$0xff] (!%p177_p2)  ;;  %v2001_v13 = vld [vmem:[%s2256_s3 + $0x18] sm:$0xff] (!%p177_p2)  ;;  %v2006_v14 = vld [vmem:[%s2256_s3 + $0x20] sm:$0xff] (!%p177_p2) }
   0xa   : > { %v2011_v15 = vld [vmem:[%s2256_s3 + $0x28] sm:$0xff] (!%p177_p2)  ;;  %v2016_v16 = vld [vmem:[%s2256_s3 + $0x30] sm:$0xff] (!%p177_p2)  ;;  %v2021_v17 = vld [vmem:[%s2256_s3 + $0x38] sm:$0xff] (!%p177_p2) }
   0xb   : > { %v2036_v18 = vld [vmem:[%s2256_s3 + $0x40] sm:$0xff] (!%p177_p2)  ;;  %v2041_v19 = vld [vmem:[%s2256_s3 + $0x48] sm:$0xff] (!%p177_p2) }
   0xd   : > { %s2260_s16 = smov (!%p221_p3, %s1490_s16), 1  ;;  %s2262_s17 = smov (!%p208_p4, %s1495_s17), 3 }
   0xe   : > { %s223_s21 = scalar_lea.vmem %s2257_s4, %s2260_s16  ;;  %s1566_s28 = sshll.u32 %s2262_s17, 4 }
   0xf   : > { %s2026_s11 = scalar_lea.vmem %s2253_s0, %s1566_s28  ;;  %s2031_s13 = scalar_lea.vmem %s2254_s1, %s1566_s28 }
  0x10 LB: >> { %vm308_vm0 = vcmask 130048   ;;  %s1501_s23 = sshll.u32 %s1885_s22, 4  ;;  %s1887_s26 = smov 16   ;;  %v1763_v40 = vpack.c.bf16 %v1987_v11, %v1982_v10  ;;  %vm311_vm1 = vcmask 261120   ;;  %vm314_vm2 = vcmask 392192   ;;  %s1885_s22 = sphi %s2045_s22, %s249_s22   ;;  %v1881_v20 = vphi %v2043_v20, %v2258_v20  }
  0x11   : >> { %1646 = vmatprep.mubr.msk.f32.mxu0 %vm308_vm0, %v1930_v0  ;;  %s255_s24 = scalar_lea.vmem %s2031_s13, %s1501_s23  ;;  %s252_s25 = scalar_lea.vmem %s2026_s11, %s1501_s23  ;;  %vm317_vm3 = vcmask 523264   ;;  %vm320_vm4 = vcmask 654336  }
  0x12   : >> { %v256_v21 = vld [vmem:[%s255_s24] sm:$0xff]  ;;  %v257_v22 = vld [vmem:[%s255_s24 + $0x8] sm:$0xff]  ;;  %s1888_s27 = smov 48   ;;  %s1889_s28 = smov 32   ;;  %1764 = vmatprep.subr.bf16.mxu1 %v1763_v40 }
  0x13   : >> { %v253_v23 = vld [vmem:[%s252_s25] sm:$0xff]  ;;  %v1814_v24 = vpack.i.bf16 %v257_v22, %v256_v21  ;;  %v254_v25 = vld [vmem:[%s252_s25 + $0x8] sm:$0xff]  ;;  %v260_v26 = vmul.f32 %v256_v21, %v256_v21  ;;  %v261_v27 = vmul.f32 %v257_v22, %v257_v22  ;;  %s1890_s29 = smov 64   ;;  %s1891_s30 = smov 80   ;;  %1766 = vmatpush3.bf16.msra.mxu1 %v1763_v40 }
  0x14   : >> { %v258_v28 = vmul.f32 %v253_v23, %v253_v23  ;;  %v259_v29 = vmul.f32 %v254_v25, %v254_v25  ;;  %v262_v30 = vmul.f32 %v256_v21, %v253_v23  ;;  %v263_v31 = vmul.f32 %v257_v22, %v254_v25  ;;  %s1892_s5 = smov 112   ;;  %s1893_s6 = smov 96  }
  0x15   : >> { %v264_v32 = vsub.f32 %v253_v23, %v256_v21  ;;  %1815 = vrot.lane.b32.xlu0 %v1814_v24, %s1887_s26  ;;  %v1824_v33 = vpack.i.bf16 %v261_v27, %v260_v26  ;;  %v265_v34 = vsub.f32 %v254_v25, %v257_v22  ;;  %v1767_v24 = vpack.c.bf16 %v2001_v13, %v1996_v12  ;;  %s249_s22 = sadd.s32 1, %s1885_s22  }
  0x16   : >> { %v1819_v35 = vpack.i.bf16 %v259_v29, %v258_v28  ;;  %v1829_v37 = vpack.i.bf16 %v263_v31, %v262_v30  ;;  %v1771_v26 = vpack.c.bf16 %v2011_v15, %v2006_v14  ;;  %p246_p5 = scmp.ge.s32.totalorder %s249_s22, 2  }
  0x17   : >> { %v266_v36 = vand.u32 2147483647, %v264_v32  ;;  %1825 = vrot.lane.b32.xlu1 %v1824_v33, %s1888_s27  ;;  %v267_v38 = vand.u32 2147483647, %v265_v34  ;;  %vm1417_vm5 = vcmask (%p246_p5), 0  }
  0x18   : >> { %1772 = vmatprep.subr.bf16.mxu1 %v1771_v26 }
  0x19   : >> { %1820 = vrot.lane.b32.xlu0 %v1819_v35, %s1889_s28  ;;  %v1834_v39 = vpack.i.bf16 %v267_v38, %v266_v36  ;;  %v1775_v35 = vpack.c.bf16 %v2021_v17, %v2016_v16 }
  0x1b   : >> { %1830 = vrot.lane.b32.xlu1 %v1829_v37, %s1890_s29  ;;  %v1779_v37 = vpack.c.bf16 %v2041_v19, %v2036_v18 }
  0x1d   : >> { %1835 = vrot.lane.b32.xlu0 %v1834_v39, %s1891_s30 }
  0x87   : >> { %v1816_v41 = vpop.permute.xlu0 %1815 }
  0x88   : >> { %v1818_v42 = vunpack.i.h.bf16 %v1816_v41  ;;  %v1817_v43 = vunpack.i.l.bf16 %v1816_v41 }
  0x89   : >> { %v1826_v44 = vpop.permute.xlu1 %1825 }
  0x8a   : >> { %v309_v48 = vsel %vm308_vm0, %v253_v23, %v1817_v43  ;;  %v310_v49 = vsel %vm308_vm0, %v254_v25, %v1818_v42  ;;  %v1828_v50 = vunpack.i.h.bf16 %v1826_v44  ;;  %v1827_v51 = vunpack.i.l.bf16 %v1826_v44 }
  0x8b   : >> { %v1821_v45 = vpop.permute.xlu0 %1820 }
  0x8c   : >> { %v1823_v46 = vunpack.i.h.bf16 %v1821_v45  ;;  %v1822_v47 = vunpack.i.l.bf16 %v1821_v45 }
  0x8d   : >> { %v1831_v52 = vpop.permute.xlu1 %1830 }
  0x8e   : >> { %v313_v53 = vsel %vm311_vm1, %v310_v49, %v1823_v46  ;;  %v312_v54 = vsel %vm311_vm1, %v309_v48, %v1822_v47  ;;  %v1833_v55 = vunpack.i.h.bf16 %v1831_v52  ;;  %v1832_v56 = vunpack.i.l.bf16 %v1831_v52 }
  0x8f   : >> { %v1836_v57 = vpop.permute.xlu0 %1835  ;;  %v315_v58 = vsel %vm314_vm2, %v312_v54, %v1827_v51  ;;  %v316_v59 = vsel %vm314_vm2, %v313_v53, %v1828_v50 }
  0x90   : >> { %v1838_v60 = vunpack.i.h.bf16 %v1836_v57  ;;  %v1837_v61 = vunpack.i.l.bf16 %v1836_v57  ;;  %v318_v62 = vsel %vm317_vm3, %v315_v58, %v1832_v56  ;;  %v319_v63 = vsel %vm317_vm3, %v316_v59, %v1833_v55 }
  0x92   : >> { %v321_v21 = vsel %vm320_vm4, %v318_v62, %v1837_v61  ;;  %v322_v22 = vsel %vm320_vm4, %v319_v63, %v1838_v60 }
  0x93   : >> { %v1759_v23 = vpack.c.bf16 %v322_v22, %v321_v21 }
  0x95   : >> { %1760 = vmatprep.subr.bf16.mxu0 %v1759_v23 }
  0x96   : >> { %1762 = vmatpush3.bf16.msra.mxu0 %v1759_v23 }
  0x97   : >> { %1768 = vmatprep.subr.bf16.mxu0 %v1767_v24 }
  0x99   : >> { %1647 = vmatmul.mubr.msk.f32.vlgmr.msra.gmra.mrb[0].mxu0 %vm308_vm0, %v1935_v1 }
  0x9a   : >> { %1649 = vmatprep.mubr.msk.f32.mxu0 %vm308_vm0, %v1940_v2  ;;  %1770 = vmatpush3.bf16.msra.mxu0 %v1767_v24 }
  0x9b   : >> { %1776 = vmatprep.subr.bf16.mxu0 %v1775_v35 }
  0x9d   : >> { %1650 = vmatmul.mubr.msk.f32.gmra.mrb[2].mxu0 %vm308_vm0, %v1945_v3 }
  0x9e   : >> { %1652 = vmatprep.mubr.msk.f32.mxu0 %vm308_vm0, %v1950_v4 }
  0xa1   : >> { %1653 = vmatmul.mubr.msk.f32.gmra.mrb[4].mxu0 %vm308_vm0, %v1955_v5 }
  0xa2   : >> { %1655 = vmatprep.mubr.msk.f32.mxu0 %vm308_vm0, %v1962_v6 }
  0xa5   : >> { %1656 = vmatmul.mubr.msk.f32.gmra.mrb[6].mxu0 %vm308_vm0, %v1967_v7 }
  0xa6   : >> { %1658 = vmatprep.mubr.msk.f32.mxu0 %vm308_vm0, %v1972_v8 }
  0xa9   : >> { %1659 = vmatmul.mubr.msk.f32.gmra.mrb[8].mxu0 %vm308_vm0, %v1977_v9 }
 0x16c   : >> { %v1648_v25 = vpop.f32.mrb[0].mxu0 }
 0x16d   : >> { %472 = vrot.lane.b32.xlu0 %v1648_v25, %s1892_s5  ;;  %v419_v27 = vpop.f32.mrb[1].mxu0 }
 0x16e   : >> { %470 = vrot.lane.b32.xlu1 %v419_v27, %s1892_s5  ;;  %1665 = vmatprep.mubr.msk.f32.mxu1 %vm308_vm0, %v419_v27 }
 0x16f   : >> { %1666 = vmatmul.mubr.msk.f32.vlgmr.msra.gmra.mrb[0].mxu1 %vm308_vm0, %v1648_v25 }
 0x170   : >> { %v1651_v28 = vpop.f32.mrb[2].mxu0  ;;  %1774 = vmatpush3.bf16.msra.mxu1 %v1771_v26 }
 0x171   : >> { %476 = vrot.lane.b32.xlu0 %v1648_v25, %s1893_s6  ;;  %v429_v29 = vpop.f32.mrb[3].mxu0  ;;  %1780 = vmatprep.subr.bf16.mxu1 %v1779_v37 }
 0x172   : >> { %474 = vrot.lane.b32.xlu1 %v419_v27, %s1893_s6  ;;  %1684 = vmatprep.mubr.msk.f32.mxu0 %vm308_vm0, %v429_v29 }
 0x173   : >> { %1685 = vmatmul.mubr.msk.f32.vlgmr.msra.gmra.mrb[10].mxu0 %vm308_vm0, %v1651_v28 }
 0x174   : >> { %v2097_v30 = vpop.f32.mrb[4].mxu0  ;;  %1778 = vmatpush3.bf16.msra.mxu0 %v1775_v35 }
 0x175   : >> { %480 = vrot.lane.b32.xlu0 %v1648_v25, %s1891_s30  ;;  %v2100_v31 = vpop.f32.mrb[5].mxu0 }
 0x176   : >> { %478 = vrot.lane.b32.xlu1 %v419_v27, %s1891_s30 }
 0x178   : >> { %v2103_v32 = vpop.f32.mrb[6].mxu0 }
 0x179   : >> { %484 = vrot.lane.b32.xlu0 %v1648_v25, %s1890_s29  ;;  %v2106_v33 = vpop.f32.mrb[7].mxu0 }
 0x17a   : >> { %482 = vrot.lane.b32.xlu1 %v419_v27, %s1890_s29 }
 0x17c   : >> { %v2109_v34 = vpop.f32.mrb[8].mxu0 }
 0x17d   : >> { %649 = vrot.lane.b32.xlu0 %v1651_v28, %s1892_s5  ;;  %v2114_v36 = vpop.f32.mrb[9].mxu0 }
 0x17e   : >> { %647 = vrot.lane.b32.xlu1 %v429_v29, %s1892_s5 }
 0x181   : >> { %653 = vrot.lane.b32.xlu0 %v1651_v28, %s1893_s6 }
 0x182   : >> { %651 = vrot.lane.b32.xlu1 %v429_v29, %s1893_s6 }
 0x185   : >> { %657 = vrot.lane.b32.xlu0 %v1651_v28, %s1891_s30 }
 0x186   : >> { %655 = vrot.lane.b32.xlu1 %v429_v29, %s1891_s30 }
 0x189   : >> { %661 = vrot.lane.b32.xlu0 %v1651_v28, %s1890_s29 }
 0x18a   : >> { %659 = vrot.lane.b32.xlu1 %v429_v29, %s1890_s29 }
 0x18d   : >> { %828 = vrot.lane.b32.xlu0 %v2097_v30, %s1892_s5 }
 0x18e   : >> { %826 = vrot.lane.b32.xlu1 %v2100_v31, %s1892_s5 }
 0x191   : >> { %832 = vrot.lane.b32.xlu0 %v2097_v30, %s1893_s6 }
 0x192   : >> { %830 = vrot.lane.b32.xlu1 %v2100_v31, %s1893_s6 }
 0x195   : >> { %836 = vrot.lane.b32.xlu0 %v2097_v30, %s1891_s30 }
 0x196   : >> { %834 = vrot.lane.b32.xlu1 %v2100_v31, %s1891_s30 }
 0x199   : >> { %840 = vrot.lane.b32.xlu0 %v2097_v30, %s1890_s29 }
 0x19a   : >> { %838 = vrot.lane.b32.xlu1 %v2100_v31, %s1890_s29 }
 0x19d   : >> { %1007 = vrot.lane.b32.xlu0 %v2103_v32, %s1892_s5 }
 0x19e   : >> { %1005 = vrot.lane.b32.xlu1 %v2106_v33, %s1892_s5 }
 0x1a1   : >> { %1011 = vrot.lane.b32.xlu0 %v2103_v32, %s1893_s6 }
 0x1a2   : >> { %1009 = vrot.lane.b32.xlu1 %v2106_v33, %s1893_s6 }
 0x1a5   : >> { %1015 = vrot.lane.b32.xlu0 %v2103_v32, %s1891_s30 }
 0x1a6   : >> { %1013 = vrot.lane.b32.xlu1 %v2106_v33, %s1891_s30 }
 0x1a9   : >> { %1186 = vrot.lane.b32.xlu0 %v2109_v34, %s1892_s5 }
 0x1aa   : >> { %1184 = vrot.lane.b32.xlu1 %v2114_v36, %s1892_s5 }
 0x1ad   : >> { %1190 = vrot.lane.b32.xlu0 %v2109_v34, %s1893_s6 }
 0x1ae   : >> { %1188 = vrot.lane.b32.xlu1 %v2114_v36, %s1893_s6 }
 0x1b1   : >> { %1194 = vrot.lane.b32.xlu0 %v2109_v34, %s1891_s30 }
 0x1b2   : >> { %1192 = vrot.lane.b32.xlu1 %v2114_v36, %s1891_s30 }
 0x1b5   : >> { %1019 = vrot.lane.b32.xlu0 %v2103_v32, %s1890_s29 }
 0x1b6   : >> { %1017 = vrot.lane.b32.xlu1 %v2106_v33, %s1890_s29 }
 0x1b9   : >> { %1198 = vrot.lane.b32.xlu0 %v2109_v34, %s1890_s29 }
 0x1ba   : >> { %1196 = vrot.lane.b32.xlu1 %v2114_v36, %s1890_s29 }
 0x1bd   : >> { %1202 = vrot.lane.b32.xlu0 %v2109_v34, %s1888_s27 }
 0x1be   : >> { %1200 = vrot.lane.b32.xlu1 %v2114_v36, %s1888_s27 }
 0x1df   : >> { %v473_v38 = vpop.permute.xlu0 %472 }
 0x1e0   : >> { %v471_v39 = vpop.permute.xlu1 %470 }
 0x1e1   : >> { %1668 = vmatprep.mubr.msk.f32.mxu1 %vm308_vm0, %v471_v39 }
 0x1e2   : >> { %1669 = vmatmul.mubr.msk.f32.gmra.mrb[2].mxu1 %vm308_vm0, %v473_v38 }
 0x1e3   : >> { %v477_v40 = vpop.permute.xlu0 %476 }
 0x1e4   : >> { %v475_v41 = vpop.permute.xlu1 %474 }
 0x1e5   : >> { %1671 = vmatprep.mubr.msk.f32.mxu1 %vm308_vm0, %v475_v41 }
 0x1e6   : >> { %1672 = vmatmul.mubr.msk.f32.gmra.mrb[4].mxu1 %vm308_vm0, %v477_v40 }
 0x1e7   : >> { %v481_v42 = vpop.permute.xlu0 %480 }
 0x1e8   : >> { %v479_v43 = vpop.permute.xlu1 %478 }
 0x1e9   : >> { %1674 = vmatprep.mubr.msk.f32.mxu1 %vm308_vm0, %v479_v43 }
 0x1ea   : >> { %1675 = vmatmul.mubr.msk.f32.gmra.mrb[6].mxu1 %vm308_vm0, %v481_v42 }
 0x1eb   : >> { %v485_v44 = vpop.permute.xlu0 %484 }
 0x1ec   : >> { %v483_v45 = vpop.permute.xlu1 %482 }
 0x1ed   : >> { %1677 = vmatprep.mubr.msk.f32.mxu1 %vm308_vm0, %v483_v45 }
 0x1ee   : >> { %1678 = vmatmul.mubr.msk.f32.gmra.mrb[8].mxu1 %vm308_vm0, %v485_v44 }
 0x1ef   : >> { %v650_v46 = vpop.permute.xlu0 %649  ;;  %1703 = vmatprep.mubr.msk.f32.mxu1 %vm308_vm0, %v2100_v31 }
 0x1f0   : >> { %v648_v47 = vpop.permute.xlu1 %647 }
 0x1f1   : >> { %1687 = vmatprep.mubr.msk.f32.mxu0 %vm308_vm0, %v648_v47 }
 0x1f2   : >> { %1688 = vmatmul.mubr.msk.f32.gmra.mrb[12].mxu0 %vm308_vm0, %v650_v46  ;;  %1704 = vmatmul.mubr.msk.f32.vlgmr.msra.gmra.mrb[10].mxu1 %vm308_vm0, %v2097_v30 }
 0x1f3   : >> { %v654_v48 = vpop.permute.xlu0 %653  ;;  %1782 = vmatpush3.bf16.msra.mxu1 %v1779_v37 }
 0x1f4   : >> { %v652_v49 = vpop.permute.xlu1 %651 }
 0x1f5   : >> { %1690 = vmatprep.mubr.msk.f32.mxu0 %vm308_vm0, %v652_v49 }
 0x1f6   : >> { %1691 = vmatmul.mubr.msk.f32.gmra.mrb[14].mxu0 %vm308_vm0, %v654_v48 }
 0x1f7   : >> { %v658_v50 = vpop.permute.xlu0 %657 }
 0x1f8   : >> { %v656_v51 = vpop.permute.xlu1 %655 }
 0x1f9   : >> { %1693 = vmatprep.mubr.msk.f32.mxu0 %vm308_vm0, %v656_v51 }
 0x1fa   : >> { %1694 = vmatmul.mubr.msk.f32.gmra.mrb[16].mxu0 %vm308_vm0, %v658_v50 }
 0x1fb   : >> { %v662_v52 = vpop.permute.xlu0 %661 }
 0x1fc   : >> { %v660_v53 = vpop.permute.xlu1 %659 }
 0x1fd   : >> { %1696 = vmatprep.mubr.msk.f32.mxu0 %vm308_vm0, %v660_v53 }
 0x1fe   : >> { %1697 = vmatmul.mubr.msk.f32.gmra.mrb[18].mxu0 %vm308_vm0, %v662_v52 }
 0x1ff   : >> { %v829_v54 = vpop.permute.xlu0 %828  ;;  %1722 = vmatprep.mubr.msk.f32.mxu0 %vm308_vm0, %v2106_v33 }
 0x200   : >> { %v827_v55 = vpop.permute.xlu1 %826 }
 0x201   : >> { %1706 = vmatprep.mubr.msk.f32.mxu1 %vm308_vm0, %v827_v55 }
 0x202   : >> { %1707 = vmatmul.mubr.msk.f32.gmra.mrb[12].mxu1 %vm308_vm0, %v829_v54  ;;  %1723 = vmatmul.mubr.msk.f32.vlgmr.msra.gmra.mrb[20].mxu0 %vm308_vm0, %v2103_v32 }
 0x203   : >> { %v833_v56 = vpop.permute.xlu0 %832 }
 0x204   : >> { %v831_v57 = vpop.permute.xlu1 %830 }
 0x205   : >> { %1709 = vmatprep.mubr.msk.f32.mxu1 %vm308_vm0, %v831_v57 }
 0x206   : >> { %1710 = vmatmul.mubr.msk.f32.gmra.mrb[14].mxu1 %vm308_vm0, %v833_v56 }
 0x207   : >> { %v837_v58 = vpop.permute.xlu0 %836 }
 0x208   : >> { %v835_v59 = vpop.permute.xlu1 %834 }
 0x209   : >> { %1712 = vmatprep.mubr.msk.f32.mxu1 %vm308_vm0, %v835_v59 }
 0x20a   : >> { %1713 = vmatmul.mubr.msk.f32.gmra.mrb[16].mxu1 %vm308_vm0, %v837_v58 }
 0x20b   : >> { %v841_v60 = vpop.permute.xlu0 %840 }
 0x20c   : >> { %v839_v61 = vpop.permute.xlu1 %838 }
 0x20d   : >> { %1715 = vmatprep.mubr.msk.f32.mxu1 %vm308_vm0, %v839_v61 }
 0x20e   : >> { %1716 = vmatmul.mubr.msk.f32.gmra.mrb[18].mxu1 %vm308_vm0, %v841_v60 }
 0x20f   : >> { %v1008_v62 = vpop.permute.xlu0 %1007  ;;  %1741 = vmatprep.mubr.msk.f32.mxu1 %vm308_vm0, %v2114_v36 }
 0x210   : >> { %v1006_v63 = vpop.permute.xlu1 %1005 }
 0x211   : >> { %1725 = vmatprep.mubr.msk.f32.mxu0 %vm308_vm0, %v1006_v63 }
 0x212   : >> { %1726 = vmatmul.mubr.msk.f32.gmra.mrb[22].mxu0 %vm308_vm0, %v1008_v62  ;;  %1742 = vmatmul.mubr.msk.f32.vlgmr.msra.gmra.mrb[20].mxu1 %vm308_vm0, %v2109_v34 }
 0x213   : >> { %v1012_v21 = vpop.permute.xlu0 %1011 }
 0x214   : >> { %v1010_v22 = vpop.permute.xlu1 %1009 }
 0x215   : >> { %1728 = vmatprep.mubr.msk.f32.mxu0 %vm308_vm0, %v1010_v22 }
 0x216   : >> { %1729 = vmatmul.mubr.msk.f32.gmra.mrb[24].mxu0 %vm308_vm0, %v1012_v21 }
 0x217   : >> { %v1016_v23 = vpop.permute.xlu0 %1015 }
 0x218   : >> { %v1014_v24 = vpop.permute.xlu1 %1013 }
 0x219   : >> { %1731 = vmatprep.mubr.msk.f32.mxu0 %vm308_vm0, %v1014_v24 }
 0x21a   : >> { %1732 = vmatmul.mubr.msk.f32.gmra.mrb[26].mxu0 %vm308_vm0, %v1016_v23 }
 0x21b   : >> { %v1187_v25 = vpop.permute.xlu0 %1186 }
 0x21c   : >> { %v1185_v26 = vpop.permute.xlu1 %1184 }
 0x21d   : >> { %1744 = vmatprep.mubr.msk.f32.mxu1 %vm308_vm0, %v1185_v26 }
 0x21e   : >> { %1745 = vmatmul.mubr.msk.f32.gmra.mrb[22].mxu1 %vm308_vm0, %v1187_v25 }
 0x21f   : >> { %v1191_v27 = vpop.permute.xlu0 %1190 }
 0x220   : >> { %v1189_v28 = vpop.permute.xlu1 %1188 }
 0x221   : >> { %1747 = vmatprep.mubr.msk.f32.mxu1 %vm308_vm0, %v1189_v28 }
 0x222   : >> { %1748 = vmatmul.mubr.msk.f32.gmra.mrb[24].mxu1 %vm308_vm0, %v1191_v27 }
 0x223   : >> { %v1195_v29 = vpop.permute.xlu0 %1194 }
 0x224   : >> { %v1193_v30 = vpop.permute.xlu1 %1192 }
 0x225   : >> { %1750 = vmatprep.mubr.msk.f32.mxu1 %vm308_vm0, %v1193_v30 }
 0x226   : >> { %1751 = vmatmul.mubr.msk.f32.gmra.mrb[26].mxu1 %vm308_vm0, %v1195_v29 }
 0x227   : >> { %v1020_v31 = vpop.permute.xlu0 %1019 }
 0x228   : >> { %v1018_v32 = vpop.permute.xlu1 %1017 }
 0x229   : >> { %1734 = vmatprep.mubr.msk.f32.mxu0 %vm308_vm0, %v1018_v32 }
 0x22a   : >> { %1735 = vmatmul.mubr.msk.f32.gmra.mrb[28].mxu0 %vm308_vm0, %v1020_v31 }
 0x22b   : >> { %v1199_v33 = vpop.permute.xlu0 %1198 }
 0x22c   : >> { %v1197_v34 = vpop.permute.xlu1 %1196 }
 0x22d   : >> { %1753 = vmatprep.mubr.msk.f32.mxu1 %vm308_vm0, %v1197_v34 }
 0x22e   : >> { %1754 = vmatmul.mubr.msk.f32.gmra.mrb[28].mxu1 %vm308_vm0, %v1199_v33 }
 0x22f   : >> { %v1203_v36 = vpop.permute.xlu0 %1202 }
 0x230   : >> { %v1201_v35 = vpop.permute.xlu1 %1200 }
 0x231   : >> { %1756 = vmatprep.mubr.msk.f32.mxu1 %vm308_vm0, %v1201_v35 }
 0x232   : >> { %1757 = vmatmul.mubr.msk.f32.gmra.mrb[30].mxu1 %vm308_vm0, %v1203_v36 }
 0x242   : >> { %v1667_v37 = vpop.f32.mrb[0].mxu1 }
 0x243   : >> { %v572_v38 = vpop.f32.mrb[1].mxu1  ;;  %v622_v45 = vmul.f32 %v1667_v37, %v1667_v37 }
 0x244   : >> { %v621_v46 = vmul.f32 %v572_v38, %v572_v38 }
 0x246   : >> { %v1686_v39 = vpop.f32.mrb[10].mxu0 }
 0x247   : >> { %v749_v40 = vpop.f32.mrb[11].mxu0  ;;  %v799_v28 = vmul.f32 %v1686_v39, %v1686_v39 }
 0x248   : >> { %v798_v29 = vmul.f32 %v749_v40, %v749_v40 }
 0x2b5   : >> { %v1670_v41 = vpop.f32.mrb[2].mxu1 }
 0x2b6   : >> { %v626_v42 = vmul.f32 %v1670_v41, %v1667_v37  ;;  %v582_v43 = vpop.f32.mrb[3].mxu1  ;;  %v624_v51 = vmul.f32 %v1670_v41, %v1670_v41 }
 0x2b7   : >> { %v625_v44 = vmul.f32 %v582_v43, %v572_v38  ;;  %v623_v52 = vmul.f32 %v582_v43, %v582_v43 }
 0x2b9   : >> { %v1673_v47 = vpop.f32.mrb[4].mxu1 }
 0x2ba   : >> { %v628_v48 = vsub.f32 %v1673_v47, %v622_v45  ;;  %v592_v49 = vpop.f32.mrb[5].mxu1 }
 0x2bb   : >> { %v627_v50 = vsub.f32 %v592_v49, %v621_v46 }
 0x2bd   : >> { %v1676_v53 = vpop.f32.mrb[6].mxu1 }
 0x2be   : >> { %v630_v54 = vsub.f32 %v1676_v53, %v624_v51  ;;  %v602_v55 = vpop.f32.mrb[7].mxu1 }
 0x2bf   : >> { %v629_v56 = vsub.f32 %v602_v55, %v623_v52 }
 0x2c0   : >> { %v638_v57 = vadd.f32 %v630_v54, %v628_v48 }
 0x2c1   : >> { %v637_v58 = vadd.f32 %v629_v56, %v627_v50  ;;  %v1679_v59 = vpop.f32.mrb[8].mxu1 }
 0x2c2   : >> { %v640_v60 = vadd.f32 0.0009, %v638_v57  ;;  %v632_v61 = vsub.f32 %v1679_v59, %v626_v42  ;;  %v612_v62 = vpop.f32.mrb[9].mxu1 }
 0x2c3   : >> { %v639_v63 = vadd.f32 0.0009, %v637_v58  ;;  %v631_v21 = vsub.f32 %v612_v62, %v625_v44 }
 0x2c4   : >> { %1839 = vrcp.f32 %v640_v60  ;;  %v634_v30 = vmul.f32 2.0, %v632_v61 }
 0x2c5   : >> { %1841 = vrcp.f32 %v639_v63  ;;  %v1689_v22 = vpop.f32.mrb[12].mxu0  ;;  %v1705_v23 = vpop.f32.mrb[10].mxu1  ;;  %v633_v32 = vmul.f32 2.0, %v631_v21 }
 0x2c6   : >> { %v803_v24 = vmul.f32 %v1689_v22, %v1686_v39  ;;  %v759_v25 = vpop.f32.mrb[13].mxu0  ;;  %v928_v26 = vpop.f32.mrb[11].mxu1  ;;  %v801_v36 = vmul.f32 %v1689_v22, %v1689_v22  ;;  %v636_v37 = vadd.f32 0.0009, %v634_v30  ;;  %v978_v62 = vmul.f32 %v1705_v23, %v1705_v23 }
 0x2c7   : >> { %v802_v27 = vmul.f32 %v759_v25, %v749_v40  ;;  %v800_v38 = vmul.f32 %v759_v25, %v759_v25  ;;  %v635_v43 = vadd.f32 0.0009, %v633_v32  ;;  %v977_v63 = vmul.f32 %v928_v26, %v928_v26 }
 0x2c9   : >> { %v1692_v31 = vpop.f32.mrb[14].mxu0 }
 0x2ca   : >> { %v805_v33 = vsub.f32 %v1692_v31, %v799_v28  ;;  %v769_v34 = vpop.f32.mrb[15].mxu0 }
 0x2cb   : >> { %v804_v35 = vsub.f32 %v769_v34, %v798_v29 }
 0x2cd   : >> { %v1695_v41 = vpop.f32.mrb[16].mxu0 }
 0x2ce   : >> { %v1840_v42 = vpop.eup %1839  ;;  %v807_v44 = vsub.f32 %v1695_v41, %v801_v36  ;;  %v779_v45 = vpop.f32.mrb[17].mxu0 }
 0x2cf   : >> { %v1842_v46 = vpop.eup %1841  ;;  %v644_v47 = vmul.f32 %v1840_v42, %v636_v37  ;;  %v806_v48 = vsub.f32 %v779_v45, %v800_v38 }
 0x2d0   : >> { %v642_v49 = vmul.f32 %v1842_v46, %v635_v43  ;;  %v815_v39 = vadd.f32 %v807_v44, %v805_v33 }
 0x2d1   : >> { %v814_v40 = vadd.f32 %v806_v48, %v804_v35  ;;  %v1698_v50 = vpop.f32.mrb[18].mxu0 }
 0x2d2   : >> { %v817_v51 = vadd.f32 0.0009, %v815_v39  ;;  %v809_v52 = vsub.f32 %v1698_v50, %v803_v24  ;;  %v789_v53 = vpop.f32.mrb[19].mxu0 }
 0x2d3   : >> { %v816_v54 = vadd.f32 0.0009, %v814_v40  ;;  %v808_v55 = vsub.f32 %v789_v53, %v802_v27 }
 0x2d4   : >> { %1843 = vrcp.f32 %v817_v51  ;;  %v811_v21 = vmul.f32 2.0, %v809_v52 }
 0x2d5   : >> { %1845 = vrcp.f32 %v816_v54  ;;  %v1708_v56 = vpop.f32.mrb[12].mxu1  ;;  %v1724_v57 = vpop.f32.mrb[20].mxu0  ;;  %v810_v25 = vmul.f32 2.0, %v808_v55 }
 0x2d6   : >> { %v982_v58 = vmul.f32 %v1708_v56, %v1705_v23  ;;  %v938_v59 = vpop.f32.mrb[13].mxu1  ;;  %v1107_v60 = vpop.f32.mrb[21].mxu0  ;;  %v980_v24 = vmul.f32 %v1708_v56, %v1708_v56  ;;  %v813_v31 = vadd.f32 0.0009, %v811_v21 }
 0x2d7   : >> { %v981_v61 = vmul.f32 %v938_v59, %v928_v26  ;;  %v979_v32 = vmul.f32 %v938_v59, %v938_v59  ;;  %v812_v34 = vadd.f32 0.0009, %v810_v25  ;;  %v1157_v59 = vmul.f32 %v1724_v57, %v1724_v57 }
 0x2d9   : >> { %v1711_v22 = vpop.f32.mrb[14].mxu1 }
 0x2da   : >> { %v984_v28 = vsub.f32 %v1711_v22, %v978_v62  ;;  %v948_v29 = vpop.f32.mrb[15].mxu1 }
 0x2db   : >> { %v983_v30 = vsub.f32 %v948_v29, %v977_v63 }
 0x2dd   : >> { %v1714_v27 = vpop.f32.mrb[16].mxu1 }
 0x2de   : >> { %v1844_v33 = vpop.eup %1843  ;;  %v986_v35 = vsub.f32 %v1714_v27, %v980_v24  ;;  %v958_v36 = vpop.f32.mrb[17].mxu1 }
 0x2df   : >> { %v1846_v37 = vpop.eup %1845  ;;  %v821_v38 = vmul.f32 %v1844_v33, %v813_v31  ;;  %v985_v41 = vsub.f32 %v958_v36, %v979_v32 }
 0x2e0   : >> { %v819_v42 = vmul.f32 %v1846_v37, %v812_v34  ;;  %v994_v23 = vadd.f32 %v986_v35, %v984_v28 }
 0x2e1   : >> { %v823_v26 = vmul.f32 %v821_v38, %v644_v47  ;;  %v993_v43 = vadd.f32 %v985_v41, %v983_v30  ;;  %v1717_v44 = vpop.f32.mrb[18].mxu1  ;;  %v1156_v47 = vmul.f32 %v1107_v60, %v1107_v60 }
 0x2e2   : >> { %v822_v45 = vmul.f32 %v819_v42, %v642_v49  ;;  %v996_v46 = vadd.f32 0.0009, %v994_v23  ;;  %v988_v48 = vsub.f32 %v1717_v44, %v982_v58  ;;  %v968_v39 = vpop.f32.mrb[19].mxu1 }
 0x2e3   : >> { %v995_v40 = vadd.f32 0.0009, %v993_v43  ;;  %v987_v50 = vsub.f32 %v968_v39, %v981_v61 }
 0x2e4   : >> { %1847 = vrcp.f32 %v996_v46  ;;  %v990_v62 = vmul.f32 2.0, %v988_v48 }
 0x2e5   : >> { %1849 = vrcp.f32 %v995_v40  ;;  %v1727_v51 = vpop.f32.mrb[22].mxu0  ;;  %v1743_v52 = vpop.f32.mrb[20].mxu1  ;;  %v989_v49 = vmul.f32 2.0, %v987_v50 }
 0x2e6   : >> { %v2231_v53 = vmul.f32 %v1727_v51, %v1724_v57  ;;  %v1117_v54 = vpop.f32.mrb[23].mxu0  ;;  %v1294_v55 = vpop.f32.mrb[21].mxu1  ;;  %v1159_v25 = vmul.f32 %v1727_v51, %v1727_v51  ;;  %v992_v61 = vadd.f32 0.0009, %v990_v62  ;;  %v1354_v41 = vmul.f32 %v1743_v52, %v1743_v52 }
 0x2e7   : >> { %v2233_v56 = vmul.f32 %v1117_v54, %v1107_v60  ;;  %v1158_v28 = vmul.f32 %v1117_v54, %v1117_v54  ;;  %v991_v24 = vadd.f32 0.0009, %v989_v49  ;;  %v1353_v44 = vmul.f32 %v1294_v55, %v1294_v55 }
 0x2e9   : >> { %v1730_v63 = vpop.f32.mrb[24].mxu0 }
 0x2ea   : >> { %v1163_v21 = vsub.f32 %v1730_v63, %v1157_v59  ;;  %v1127_v58 = vpop.f32.mrb[25].mxu0 }
 0x2eb   : >> { %v1162_v22 = vsub.f32 %v1127_v58, %v1156_v47 }
 0x2ed   : >> { %v1733_v29 = vpop.f32.mrb[26].mxu0 }
 0x2ee   : >> { %v1848_v30 = vpop.eup %1847  ;;  %v1165_v31 = vsub.f32 %v1733_v29, %v1159_v25  ;;  %v1137_v32 = vpop.f32.mrb[27].mxu0 }
 0x2ef   : >> { %v1850_v27 = vpop.eup %1849  ;;  %v1000_v33 = vmul.f32 %v1848_v30, %v992_v61  ;;  %v1164_v34 = vsub.f32 %v1137_v32, %v1158_v28 }
 0x2f0   : >> { %v998_v35 = vmul.f32 %v1850_v27, %v991_v24  ;;  %v1173_v57 = vadd.f32 %v1165_v31, %v1163_v21 }
 0x2f1   : >> { %v1002_v60 = vmul.f32 %v1000_v33, %v823_v26  ;;  %v1172_v36 = vadd.f32 %v1164_v34, %v1162_v22  ;;  %v1746_v37 = vpop.f32.mrb[22].mxu1 }
 0x2f2   : >> { %v1001_v38 = vmul.f32 %v998_v35, %v822_v45  ;;  %v1356_v42 = vmul.f32 %v1746_v37, %v1746_v37  ;;  %v1358_v23 = vmul.f32 %v1746_v37, %v1743_v52  ;;  %v1304_v43 = vpop.f32.mrb[23].mxu1  ;;  %v1175_v46 = vadd.f32 0.0009, %v1173_v57 }
 0x2f3   : >> { %v1355_v48 = vmul.f32 %v1304_v43, %v1304_v43  ;;  %v1357_v39 = vmul.f32 %v1304_v43, %v1294_v55  ;;  %v1174_v54 = vadd.f32 0.0009, %v1172_v36 }
 0x2f4   : >> { %v1384_v40 = vadd.f32 %v1356_v42, %v1354_v41  ;;  %1851 = vrcp.f32 %v1175_v46  ;;  %v1380_v22 = vmul.f32 2.0, %v1358_v23 }
 0x2f5   : >> { %v1383_v50 = vadd.f32 %v1355_v48, %v1353_v44  ;;  %v1749_v51 = vpop.f32.mrb[24].mxu1  ;;  %v1379_v61 = vmul.f32 2.0, %v1357_v39 }
 0x2f6   : >> { %v1386_v59 = vadd.f32 0.0001, %v1384_v40  ;;  %v1360_v47 = vsub.f32 %v1749_v51, %v1354_v41  ;;  %v1314_v62 = vpop.f32.mrb[25].mxu1  ;;  %v1382_v33 = vadd.f32 0.0001, %v1380_v22 }
 0x2f7   : >> { %v1385_v26 = vadd.f32 0.0001, %v1383_v50  ;;  %v1359_v63 = vsub.f32 %v1314_v62, %v1353_v44  ;;  %v1381_v36 = vadd.f32 0.0001, %v1379_v61 }
 0x2f8   : >> { %1853 = vrcp.f32 %v1386_v59 }
 0x2f9   : >> { %1855 = vrcp.f32 %v1385_v26  ;;  %v1752_v45 = vpop.f32.mrb[26].mxu1 }
 0x2fa   : >> { %1857 = vrcp.f32 %v1174_v54  ;;  %v1362_v52 = vsub.f32 %v1752_v45, %v1356_v42  ;;  %v1324_v49 = vpop.f32.mrb[27].mxu1 }
 0x2fb   : >> { %v1361_v21 = vsub.f32 %v1324_v49, %v1355_v48 }
 0x2fc   : >> { %v1370_v58 = vadd.f32 %v1362_v52, %v1360_v47 }
 0x2fd   : >> { %v1369_v55 = vadd.f32 %v1361_v21, %v1359_v63  ;;  %v1736_v25 = vpop.f32.mrb[28].mxu0 }
 0x2fe   : >> { %v1372_v28 = vadd.f32 0.0009, %v1370_v58  ;;  %v1167_v29 = vsub.f32 %v1736_v25, %v2231_v53  ;;  %v1147_v30 = vpop.f32.mrb[29].mxu0  ;;  %v1852_v27 = vpop.eup %1851 }
 0x2ff   : >> { %v1371_v24 = vadd.f32 0.0009, %v1369_v55  ;;  %v1166_v31 = vsub.f32 %v1147_v30, %v2233_v56 }
 0x300   : >> { %1859 = vrcp.f32 %v1372_v28  ;;  %v1169_v32 = vmul.f32 2.0, %v1167_v29 }
 0x301   : >> { %1861 = vrcp.f32 %v1371_v24  ;;  %v1168_v34 = vmul.f32 2.0, %v1166_v31  ;;  %v1755_v35 = vpop.f32.mrb[28].mxu1 }
 0x302   : >> { %v1854_v57 = vpop.eup %1853  ;;  %v1171_v37 = vadd.f32 0.0009, %v1169_v32  ;;  %v1364_v41 = vsub.f32 %v1755_v35, %v1358_v23  ;;  %v1334_v42 = vpop.f32.mrb[29].mxu1 }
 0x303   : >> { %v1856_v43 = vpop.eup %1855  ;;  %v1390_v44 = vmul.f32 %v1854_v57, %v1382_v33  ;;  %v1170_v46 = vadd.f32 0.0009, %v1168_v34  ;;  %v1363_v53 = vsub.f32 %v1334_v42, %v1357_v39 }
 0x304   : >> { %v1858_v48 = vpop.eup %1857  ;;  %v1388_v40 = vmul.f32 %v1856_v43, %v1381_v36  ;;  %v1179_v50 = vmul.f32 %v1852_v27, %v1171_v37  ;;  %v1366_v51 = vmul.f32 2.0, %v1364_v41 }
 0x305   : >> { %v1177_v56 = vmul.f32 %v1858_v48, %v1170_v46  ;;  %v1758_v54 = vpop.f32.mrb[30].mxu1  ;;  %v1365_v47 = vmul.f32 2.0, %v1363_v53 }
 0x306   : >> { %v1181_v59 = vmul.f32 %v1179_v50, %v1002_v60  ;;  %v1344_v62 = vpop.f32.mrb[31].mxu1  ;;  %v1368_v63 = vadd.f32 0.0009, %v1366_v51  ;;  %v1398_v29 = vmul.f32 0.975, %v1758_v54 }
 0x307   : >> { %v1180_v26 = vmul.f32 %v1177_v56, %v1001_v38  ;;  %v1367_v52 = vadd.f32 0.0009, %v1365_v47  ;;  %v1397_v24 = vmul.f32 0.975, %v1344_v62 }
 0x30a   : >> { %v1860_v45 = vpop.eup %1859 }
 0x30b   : >> { %v1862_v49 = vpop.eup %1861  ;;  %v1376_v23 = vmul.f32 %v1860_v45, %v1368_v63 }
 0x30c   : >> { %v1374_v21 = vmul.f32 %v1862_v49, %v1367_v52 }
 0x30d   : >> { %v1378_v58 = vmul.f32 %v1376_v23, %v1181_v59 }
 0x30e   : >> { %v1377_v22 = vmul.f32 %v1374_v21, %v1180_v26 }
 0x30f   : >> { %v1392_v55 = vmul.f32 %v1390_v44, %v1378_v58 }
 0x310   : >> { %v1391_v39 = vmul.f32 %v1388_v40, %v1377_v22 }
 0x311   : >> { %v1394_v25 = vsub.f32 1.0, %v1392_v55 }
 0x312   : >> { %v1393_v61 = vsub.f32 1.0, %v1391_v39 }
 0x313   : >> { %v1396_v28 = vmul.f32 0.025, %v1394_v25 }
 0x314   : >> { %v1395_v30 = vmul.f32 0.025, %v1393_v61 }
 0x315   : >> { %v1400_v60 = vadd.f32 %v1398_v29, %v1396_v28 }
 0x316   : >> { %v1399_v31 = vadd.f32 %v1397_v24, %v1395_v30 }
 0x317   : >> { %v1402_v32 = vmul.f32 20.0, %v1400_v60 }
 0x318   : >> { %v1401_v38 = vmul.f32 20.0, %v1399_v31 }
 0x319   : >> { %v1406_v27 = vsel %vm308_vm0, %v1402_v32, 0.0 }
 0x31a   : >> { %1407 = vadd.xlane.f32.xlu0 %v1406_v27  ;;  %v1403_v33 = vsel %vm308_vm0, %v1401_v38, 0.0 }
 0x31b   : >> { %1404 = vadd.xlane.f32.xlu1 %v1403_v33 }
 0x3a7   : >> { %v1408_v34 = vpop.xlane.xlu0 %1407 }
 0x3a8   : >> { %v1405_v35 = vpop.xlane.xlu1 %1404 }
 0x3a9   : >> { %v1409_v57 = vadd.f32 %v1408_v34, %v1405_v35 }
 0x3ab   : >> { %v1410_v36 = vrot.slane %v1409_v57, 4 }
 0x3ad   : >> { %v1411_v37 = vadd.f32 %v1410_v36, %v1409_v57 }
 0x3af   : >> { %v1412_v41 = vrot.slane %v1411_v37, 2 }
 0x3b1   : >> { %v1413_v42 = vadd.f32 %v1412_v41, %v1411_v37 }
 0x3b3   : >> { %v1414_v43 = vrot.slane %v1413_v42, 1  ;;  %248 = sbr.rel (!%p246_p5) target bundleno = 16 (0x10), region = 78 }
 0x3b5   : >> { %v1415_v44 = vadd.f32 %v1414_v43, %v1413_v42 }
 0x3b7   : >> { %v1416_v46 = vadd.f32 %v1881_v20, %v1415_v44  }
 0x3b9   : >> { %v2258_v20 = vmov %v1416_v46  ;;  %1418 = vst.msk [vmem:[%s223_s21] sm:$0x1] (%p246_p5), %vm1417_vm5, %v1416_v46 }
 0x3ba PF: > { %s14_s15 = sadd.s32 1, %s1877_s15  }
 0x3bb   : > { %p11_p6 = scmp.ge.s32.totalorder %s14_s15, 4  }
 0x3bd   :  { %13 = sbr.rel (!%p11_p6) target bundleno = 1 (0x1), region = 89 }

// kernel: ms_ssim_l1_loss_pallas.1
= control target key start
LH: loop header
LB: loop body
LE: loop exit
PB: predicated region body
PF: predicated region fallthrough
CT: control target
= control target key end

     0   :  { %s1919_s15 = smov 0   ;;  %s2253_s0 = inlined_call_operand.vmem [shape: f32[4,16,16], index: 0, kind: input, shape index: {}]   ;;  %s2254_s1 = inlined_call_operand.vmem [shape: f32[4,16,16], index: 1, kind: input, shape index: {}]   ;;  %s2255_s2 = inlined_call_operand.vmem [shape: f32[80,16], index: 2, kind: input, shape index: {}]   ;;  %s2256_s3 = inlined_call_operand.vmem [shape: f32[5,16,16], index: 3, kind: input, shape index: {}]   ;;  %s2257_s4 = inlined_call_operand.vmem [shape: f32[2,1,1], index: 4, kind: output, shape index: {}]  }
   0x1 LB: > { %s1490_s16 = sadd.s32 4294967295, %s1877_s15   ;;  %p1494_p0 = scmp.ge.s32.totalorder %s1877_s15, 1  ;;  %s1877_s15 = sphi %s1919_s15, %s14_s15  }
   0x2   : > { %p176_p1 = scmp.lt.s32.totalorder %s1877_s15, 3 }
   0x4   : > { %p177_p2 = pnand %p1494_p0, %p176_p1 }
   0x5   : > { %s1495_s17 = sshll.u32 (!%p177_p2), %s1490_s16, 1  ;;  %p221_p3 = scmp.lt.s32.totalorder (!%p177_p2), %s1490_s16, 1  ;;  %v1930_v0 = vld [vmem:[%s2255_s2] sm:$0xff] (!%p177_p2)  ;;  %v1935_v1 = vld [vmem:[%s2255_s2 + $0x8] sm:$0xff] (!%p177_p2)  ;;  %v1940_v2 = vld [vmem:[%s2255_s2 + $0x10] sm:$0xff] (!%p177_p2)  ;;  %v2043_v20 = vmov (!%p177_p2), 0.0  }
   0x6   : > { %180 = sbr.rel (%p177_p2) target bundleno = 954 (0x3ba), region = 36  ;;  %p208_p4 = scmp.lt.s32.totalorder (!%p177_p2), %s1495_s17, 3  ;;  %v1945_v3 = vld [vmem:[%s2255_s2 + $0x18] sm:$0xff] (!%p177_p2)  ;;  %v1950_v4 = vld [vmem:[%s2255_s2 + $0x20] sm:$0xff] (!%p177_p2)  ;;  %v1955_v5 = vld [vmem:[%s2255_s2 + $0x28] sm:$0xff] (!%p177_p2) }
   0x7   : > { %v1962_v6 = vld [vmem:[%s2255_s2 + $0x30] sm:$0xff] (!%p177_p2)  ;;  %v1967_v7 = vld [vmem:[%s2255_s2 + $0x38] sm:$0xff] (!%p177_p2)  ;;  %v1972_v8 = vld [vmem:[%s2255_s2 + $0x40] sm:$0xff] (!%p177_p2)  ;;  %s2045_s22 = smov (!%p177_p2), 0  }
   0x8   : > { %v1977_v9 = vld [vmem:[%s2255_s2 + $0x48] sm:$0xff] (!%p177_p2)  ;;  %v1982_v10 = vld [vmem:[%s2256_s3] sm:$0xff] (!%p177_p2)  ;;  %v1996_v12 = vld [vmem:[%s2256_s3 + $0x10] sm:$0xff] (!%p177_p2) }
   0x9   : > { %v1987_v11 = vld [vmem:[%s2256_s3 + $0x8] sm:$0xff] (!%p177_p2)  ;;  %v2001_v13 = vld [vmem:[%s2256_s3 + $0x18] sm:$0xff] (!%p177_p2)  ;;  %v2006_v14 = vld [vmem:[%s2256_s3 + $0x20] sm:$0xff] (!%p177_p2) }
   0xa   : > { %v2011_v15 = vld [vmem:[%s2256_s3 + $0x28] sm:$0xff] (!%p177_p2)  ;;  %v2016_v16 = vld [vmem:[%s2256_s3 + $0x30] sm:$0xff] (!%p177_p2)  ;;  %v2021_v17 = vld [vmem:[%s2256_s3 + $0x38] sm:$0xff] (!%p177_p2) }
   0xb   : > { %v2036_v18 = vld [vmem:[%s2256_s3 + $0x40] sm:$0xff] (!%p177_p2)  ;;  %v2041_v19 = vld [vmem:[%s2256_s3 + $0x48] sm:$0xff] (!%p177_p2) }
   0xd   : > { %s2260_s16 = smov (!%p221_p3, %s1490_s16), 1  ;;  %s2262_s17 = smov (!%p208_p4, %s1495_s17), 3 }
   0xe   : > { %s223_s21 = scalar_lea.vmem %s2257_s4, %s2260_s16  ;;  %s1566_s28 = sshll.u32 %s2262_s17, 4 }
   0xf   : > { %s2026_s11 = scalar_lea.vmem %s2253_s0, %s1566_s28  ;;  %s2031_s13 = scalar_lea.vmem %s2254_s1, %s1566_s28 }
  0x10 LB: >> { %vm308_vm0 = vcmask 130048   ;;  %s1501_s23 = sshll.u32 %s1885_s22, 4  ;;  %s1887_s26 = smov 16   ;;  %v1763_v40 = vpack.c.bf16 %v1987_v11, %v1982_v10  ;;  %vm311_vm1 = vcmask 261120   ;;  %vm314_vm2 = vcmask 392192   ;;  %s1885_s22 = sphi %s2045_s22, %s249_s22   ;;  %v1881_v20 = vphi %v2043_v20, %v2258_v20  }
  0x11   : >> { %1646 = vmatprep.mubr.msk.f32.mxu0 %vm308_vm0, %v1930_v0  ;;  %s255_s24 = scalar_lea.vmem %s2031_s13, %s1501_s23  ;;  %s252_s25 = scalar_lea.vmem %s2026_s11, %s1501_s23  ;;  %vm317_vm3 = vcmask 523264   ;;  %vm320_vm4 = vcmask 654336  }
  0x12   : >> { %v256_v21 = vld [vmem:[%s255_s24] sm:$0xff]  ;;  %v257_v22 = vld [vmem:[%s255_s24 + $0x8] sm:$0xff]  ;;  %s1888_s27 = smov 48   ;;  %s1889_s28 = smov 32   ;;  %1764 = vmatprep.subr.bf16.mxu1 %v1763_v40 }
  0x13   : >> { %v253_v23 = vld [vmem:[%s252_s25] sm:$0xff]  ;;  %v1814_v24 = vpack.i.bf16 %v257_v22, %v256_v21  ;;  %v254_v25 = vld [vmem:[%s252_s25 + $0x8] sm:$0xff]  ;;  %v260_v26 = vmul.f32 %v256_v21, %v256_v21  ;;  %v261_v27 = vmul.f32 %v257_v22, %v257_v22  ;;  %s1890_s29 = smov 64   ;;  %s1891_s30 = smov 80   ;;  %1766 = vmatpush3.bf16.msra.mxu1 %v1763_v40 }
  0x14   : >> { %v258_v28 = vmul.f32 %v253_v23, %v253_v23  ;;  %v259_v29 = vmul.f32 %v254_v25, %v254_v25  ;;  %v262_v30 = vmul.f32 %v256_v21, %v253_v23  ;;  %v263_v31 = vmul.f32 %v257_v22, %v254_v25  ;;  %s1892_s5 = smov 112   ;;  %s1893_s6 = smov 96  }
  0x15   : >> { %v264_v32 = vsub.f32 %v253_v23, %v256_v21  ;;  %1815 = vrot.lane.b32.xlu0 %v1814_v24, %s1887_s26  ;;  %v1824_v33 = vpack.i.bf16 %v261_v27, %v260_v26  ;;  %v265_v34 = vsub.f32 %v254_v25, %v257_v22  ;;  %v1767_v24 = vpack.c.bf16 %v2001_v13, %v1996_v12  ;;  %s249_s22 = sadd.s32 1, %s1885_s22  }
  0x16   : >> { %v1819_v35 = vpack.i.bf16 %v259_v29, %v258_v28  ;;  %v1829_v37 = vpack.i.bf16 %v263_v31, %v262_v30  ;;  %v1771_v26 = vpack.c.bf16 %v2011_v15, %v2006_v14  ;;  %p246_p5 = scmp.ge.s32.totalorder %s249_s22, 2  }
  0x17   : >> { %v266_v36 = vand.u32 2147483647, %v264_v32  ;;  %1825 = vrot.lane.b32.xlu1 %v1824_v33, %s1888_s27  ;;  %v267_v38 = vand.u32 2147483647, %v265_v34  ;;  %vm1417_vm5 = vcmask (%p246_p5), 0  }
  0x18   : >> { %1772 = vmatprep.subr.bf16.mxu1 %v1771_v26 }
  0x19   : >> { %1820 = vrot.lane.b32.xlu0 %v1819_v35, %s1889_s28  ;;  %v1834_v39 = vpack.i.bf16 %v267_v38, %v266_v36  ;;  %v1775_v35 = vpack.c.bf16 %v2021_v17, %v2016_v16 }
  0x1b   : >> { %1830 = vrot.lane.b32.xlu1 %v1829_v37, %s1890_s29  ;;  %v1779_v37 = vpack.c.bf16 %v2041_v19, %v2036_v18 }
  0x1d   : >> { %1835 = vrot.lane.b32.xlu0 %v1834_v39, %s1891_s30 }
  0x87   : >> { %v1816_v41 = vpop.permute.xlu0 %1815 }
  0x88   : >> { %v1818_v42 = vunpack.i.h.bf16 %v1816_v41  ;;  %v1817_v43 = vunpack.i.l.bf16 %v1816_v41 }
  0x89   : >> { %v1826_v44 = vpop.permute.xlu1 %1825 }
  0x8a   : >> { %v309_v48 = vsel %vm308_vm0, %v253_v23, %v1817_v43  ;;  %v310_v49 = vsel %vm308_vm0, %v254_v25, %v1818_v42  ;;  %v1828_v50 = vunpack.i.h.bf16 %v1826_v44  ;;  %v1827_v51 = vunpack.i.l.bf16 %v1826_v44 }
  0x8b   : >> { %v1821_v45 = vpop.permute.xlu0 %1820 }
  0x8c   : >> { %v1823_v46 = vunpack.i.h.bf16 %v1821_v45  ;;  %v1822_v47 = vunpack.i.l.bf16 %v1821_v45 }
  0x8d   : >> { %v1831_v52 = vpop.permute.xlu1 %1830 }
  0x8e   : >> { %v313_v53 = vsel %vm311_vm1, %v310_v49, %v1823_v46  ;;  %v312_v54 = vsel %vm311_vm1, %v309_v48, %v1822_v47  ;;  %v1833_v55 = vunpack.i.h.bf16 %v1831_v52  ;;  %v1832_v56 = vunpack.i.l.bf16 %v1831_v52 }
  0x8f   : >> { %v1836_v57 = vpop.permute.xlu0 %1835  ;;  %v315_v58 = vsel %vm314_vm2, %v312_v54, %v1827_v51  ;;  %v316_v59 = vsel %vm314_vm2, %v313_v53, %v1828_v50 }
  0x90   : >> { %v1838_v60 = vunpack.i.h.bf16 %v1836_v57  ;;  %v1837_v61 = vunpack.i.l.bf16 %v1836_v57  ;;  %v318_v62 = vsel %vm317_vm3, %v315_v58, %v1832_v56  ;;  %v319_v63 = vsel %vm317_vm3, %v316_v59, %v1833_v55 }
  0x92   : >> { %v321_v21 = vsel %vm320_vm4, %v318_v62, %v1837_v61  ;;  %v322_v22 = vsel %vm320_vm4, %v319_v63, %v1838_v60 }
  0x93   : >> { %v1759_v23 = vpack.c.bf16 %v322_v22, %v321_v21 }
  0x95   : >> { %1760 = vmatprep.subr.bf16.mxu0 %v1759_v23 }
  0x96   : >> { %1762 = vmatpush3.bf16.msra.mxu0 %v1759_v23 }
  0x97   : >> { %1768 = vmatprep.subr.bf16.mxu0 %v1767_v24 }
  0x99   : >> { %1647 = vmatmul.mubr.msk.f32.vlgmr.msra.gmra.mrb[0].mxu0 %vm308_vm0, %v1935_v1 }
  0x9a   : >> { %1649 = vmatprep.mubr.msk.f32.mxu0 %vm308_vm0, %v1940_v2  ;;  %1770 = vmatpush3.bf16.msra.mxu0 %v1767_v24 }
  0x9b   : >> { %1776 = vmatprep.subr.bf16.mxu0 %v1775_v35 }
  0x9d   : >> { %1650 = vmatmul.mubr.msk.f32.gmra.mrb[2].mxu0 %vm308_vm0, %v1945_v3 }
  0x9e   : >> { %1652 = vmatprep.mubr.msk.f32.mxu0 %vm308_vm0, %v1950_v4 }
  0xa1   : >> { %1653 = vmatmul.mubr.msk.f32.gmra.mrb[4].mxu0 %vm308_vm0, %v1955_v5 }
  0xa2   : >> { %1655 = vmatprep.mubr.msk.f32.mxu0 %vm308_vm0, %v1962_v6 }
  0xa5   : >> { %1656 = vmatmul.mubr.msk.f32.gmra.mrb[6].mxu0 %vm308_vm0, %v1967_v7 }
  0xa6   : >> { %1658 = vmatprep.mubr.msk.f32.mxu0 %vm308_vm0, %v1972_v8 }
  0xa9   : >> { %1659 = vmatmul.mubr.msk.f32.gmra.mrb[8].mxu0 %vm308_vm0, %v1977_v9 }
 0x16c   : >> { %v1648_v25 = vpop.f32.mrb[0].mxu0 }
 0x16d   : >> { %472 = vrot.lane.b32.xlu0 %v1648_v25, %s1892_s5  ;;  %v419_v27 = vpop.f32.mrb[1].mxu0 }
 0x16e   : >> { %470 = vrot.lane.b32.xlu1 %v419_v27, %s1892_s5  ;;  %1665 = vmatprep.mubr.msk.f32.mxu1 %vm308_vm0, %v419_v27 }
 0x16f   : >> { %1666 = vmatmul.mubr.msk.f32.vlgmr.msra.gmra.mrb[0].mxu1 %vm308_vm0, %v1648_v25 }
 0x170   : >> { %v1651_v28 = vpop.f32.mrb[2].mxu0  ;;  %1774 = vmatpush3.bf16.msra.mxu1 %v1771_v26 }
 0x171   : >> { %476 = vrot.lane.b32.xlu0 %v1648_v25, %s1893_s6  ;;  %v429_v29 = vpop.f32.mrb[3].mxu0  ;;  %1780 = vmatprep.subr.bf16.mxu1 %v1779_v37 }
 0x172   : >> { %474 = vrot.lane.b32.xlu1 %v419_v27, %s1893_s6  ;;  %1684 = vmatprep.mubr.msk.f32.mxu0 %vm308_vm0, %v429_v29 }
 0x173   : >> { %1685 = vmatmul.mubr.msk.f32.vlgmr.msra.gmra.mrb[10].mxu0 %vm308_vm0, %v1651_v28 }
 0x174   : >> { %v2097_v30 = vpop.f32.mrb[4].mxu0  ;;  %1778 = vmatpush3.bf16.msra.mxu0 %v1775_v35 }
 0x175   : >> { %480 = vrot.lane.b32.xlu0 %v1648_v25, %s1891_s30  ;;  %v2100_v31 = vpop.f32.mrb[5].mxu0 }
 0x176   : >> { %478 = vrot.lane.b32.xlu1 %v419_v27, %s1891_s30 }
 0x178   : >> { %v2103_v32 = vpop.f32.mrb[6].mxu0 }
 0x179   : >> { %484 = vrot.lane.b32.xlu0 %v1648_v25, %s1890_s29  ;;  %v2106_v33 = vpop.f32.mrb[7].mxu0 }
 0x17a   : >> { %482 = vrot.lane.b32.xlu1 %v419_v27, %s1890_s29 }
 0x17c   : >> { %v2109_v34 = vpop.f32.mrb[8].mxu0 }
 0x17d   : >> { %649 = vrot.lane.b32.xlu0 %v1651_v28, %s1892_s5  ;;  %v2114_v36 = vpop.f32.mrb[9].mxu0 }
 0x17e   : >> { %647 = vrot.lane.b32.xlu1 %v429_v29, %s1892_s5 }
 0x181   : >> { %653 = vrot.lane.b32.xlu0 %v1651_v28, %s1893_s6 }
 0x182   : >> { %651 = vrot.lane.b32.xlu1 %v429_v29, %s1893_s6 }
 0x185   : >> { %657 = vrot.lane.b32.xlu0 %v1651_v28, %s1891_s30 }
 0x186   : >> { %655 = vrot.lane.b32.xlu1 %v429_v29, %s1891_s30 }
 0x189   : >> { %661 = vrot.lane.b32.xlu0 %v1651_v28, %s1890_s29 }
 0x18a   : >> { %659 = vrot.lane.b32.xlu1 %v429_v29, %s1890_s29 }
 0x18d   : >> { %828 = vrot.lane.b32.xlu0 %v2097_v30, %s1892_s5 }
 0x18e   : >> { %826 = vrot.lane.b32.xlu1 %v2100_v31, %s1892_s5 }
 0x191   : >> { %832 = vrot.lane.b32.xlu0 %v2097_v30, %s1893_s6 }
 0x192   : >> { %830 = vrot.lane.b32.xlu1 %v2100_v31, %s1893_s6 }
 0x195   : >> { %836 = vrot.lane.b32.xlu0 %v2097_v30, %s1891_s30 }
 0x196   : >> { %834 = vrot.lane.b32.xlu1 %v2100_v31, %s1891_s30 }
 0x199   : >> { %840 = vrot.lane.b32.xlu0 %v2097_v30, %s1890_s29 }
 0x19a   : >> { %838 = vrot.lane.b32.xlu1 %v2100_v31, %s1890_s29 }
 0x19d   : >> { %1007 = vrot.lane.b32.xlu0 %v2103_v32, %s1892_s5 }
 0x19e   : >> { %1005 = vrot.lane.b32.xlu1 %v2106_v33, %s1892_s5 }
 0x1a1   : >> { %1011 = vrot.lane.b32.xlu0 %v2103_v32, %s1893_s6 }
 0x1a2   : >> { %1009 = vrot.lane.b32.xlu1 %v2106_v33, %s1893_s6 }
 0x1a5   : >> { %1015 = vrot.lane.b32.xlu0 %v2103_v32, %s1891_s30 }
 0x1a6   : >> { %1013 = vrot.lane.b32.xlu1 %v2106_v33, %s1891_s30 }
 0x1a9   : >> { %1186 = vrot.lane.b32.xlu0 %v2109_v34, %s1892_s5 }
 0x1aa   : >> { %1184 = vrot.lane.b32.xlu1 %v2114_v36, %s1892_s5 }
 0x1ad   : >> { %1190 = vrot.lane.b32.xlu0 %v2109_v34, %s1893_s6 }
 0x1ae   : >> { %1188 = vrot.lane.b32.xlu1 %v2114_v36, %s1893_s6 }
 0x1b1   : >> { %1194 = vrot.lane.b32.xlu0 %v2109_v34, %s1891_s30 }
 0x1b2   : >> { %1192 = vrot.lane.b32.xlu1 %v2114_v36, %s1891_s30 }
 0x1b5   : >> { %1019 = vrot.lane.b32.xlu0 %v2103_v32, %s1890_s29 }
 0x1b6   : >> { %1017 = vrot.lane.b32.xlu1 %v2106_v33, %s1890_s29 }
 0x1b9   : >> { %1198 = vrot.lane.b32.xlu0 %v2109_v34, %s1890_s29 }
 0x1ba   : >> { %1196 = vrot.lane.b32.xlu1 %v2114_v36, %s1890_s29 }
 0x1bd   : >> { %1202 = vrot.lane.b32.xlu0 %v2109_v34, %s1888_s27 }
 0x1be   : >> { %1200 = vrot.lane.b32.xlu1 %v2114_v36, %s1888_s27 }
 0x1df   : >> { %v473_v38 = vpop.permute.xlu0 %472 }
 0x1e0   : >> { %v471_v39 = vpop.permute.xlu1 %470 }
 0x1e1   : >> { %1668 = vmatprep.mubr.msk.f32.mxu1 %vm308_vm0, %v471_v39 }
 0x1e2   : >> { %1669 = vmatmul.mubr.msk.f32.gmra.mrb[2].mxu1 %vm308_vm0, %v473_v38 }
 0x1e3   : >> { %v477_v40 = vpop.permute.xlu0 %476 }
 0x1e4   : >> { %v475_v41 = vpop.permute.xlu1 %474 }
 0x1e5   : >> { %1671 = vmatprep.mubr.msk.f32.mxu1 %vm308_vm0, %v475_v41 }
 0x1e6   : >> { %1672 = vmatmul.mubr.msk.f32.gmra.mrb[4].mxu1 %vm308_vm0, %v477_v40 }
 0x1e7   : >> { %v481_v42 = vpop.permute.xlu0 %480 }
 0x1e8   : >> { %v479_v43 = vpop.permute.xlu1 %478 }
 0x1e9   : >> { %1674 = vmatprep.mubr.msk.f32.mxu1 %vm308_vm0, %v479_v43 }
 0x1ea   : >> { %1675 = vmatmul.mubr.msk.f32.gmra.mrb[6].mxu1 %vm308_vm0, %v481_v42 }
 0x1eb   : >> { %v485_v44 = vpop.permute.xlu0 %484 }
 0x1ec   : >> { %v483_v45 = vpop.permute.xlu1 %482 }
 0x1ed   : >> { %1677 = vmatprep.mubr.msk.f32.mxu1 %vm308_vm0, %v483_v45 }
 0x1ee   : >> { %1678 = vmatmul.mubr.msk.f32.gmra.mrb[8].mxu1 %vm308_vm0, %v485_v44 }
 0x1ef   : >> { %v650_v46 = vpop.permute.xlu0 %649  ;;  %1703 = vmatprep.mubr.msk.f32.mxu1 %vm308_vm0, %v2100_v31 }
 0x1f0   : >> { %v648_v47 = vpop.permute.xlu1 %647 }
 0x1f1   : >> { %1687 = vmatprep.mubr.msk.f32.mxu0 %vm308_vm0, %v648_v47 }
 0x1f2   : >> { %1688 = vmatmul.mubr.msk.f32.gmra.mrb[12].mxu0 %vm308_vm0, %v650_v46  ;;  %1704 = vmatmul.mubr.msk.f32.vlgmr.msra.gmra.mrb[10].mxu1 %vm308_vm0, %v2097_v30 }
 0x1f3   : >> { %v654_v48 = vpop.permute.xlu0 %653  ;;  %1782 = vmatpush3.bf16.msra.mxu1 %v1779_v37 }
 0x1f4   : >> { %v652_v49 = vpop.permute.xlu1 %651 }
 0x1f5   : >> { %1690 = vmatprep.mubr.msk.f32.mxu0 %vm308_vm0, %v652_v49 }
 0x1f6   : >> { %1691 = vmatmul.mubr.msk.f32.gmra.mrb[14].mxu0 %vm308_vm0, %v654_v48 }
 0x1f7   : >> { %v658_v50 = vpop.permute.xlu0 %657 }
 0x1f8   : >> { %v656_v51 = vpop.permute.xlu1 %655 }
 0x1f9   : >> { %1693 = vmatprep.mubr.msk.f32.mxu0 %vm308_vm0, %v656_v51 }
 0x1fa   : >> { %1694 = vmatmul.mubr.msk.f32.gmra.mrb[16].mxu0 %vm308_vm0, %v658_v50 }
 0x1fb   : >> { %v662_v52 = vpop.permute.xlu0 %661 }
 0x1fc   : >> { %v660_v53 = vpop.permute.xlu1 %659 }
 0x1fd   : >> { %1696 = vmatprep.mubr.msk.f32.mxu0 %vm308_vm0, %v660_v53 }
 0x1fe   : >> { %1697 = vmatmul.mubr.msk.f32.gmra.mrb[18].mxu0 %vm308_vm0, %v662_v52 }
 0x1ff   : >> { %v829_v54 = vpop.permute.xlu0 %828  ;;  %1722 = vmatprep.mubr.msk.f32.mxu0 %vm308_vm0, %v2106_v33 }
 0x200   : >> { %v827_v55 = vpop.permute.xlu1 %826 }
 0x201   : >> { %1706 = vmatprep.mubr.msk.f32.mxu1 %vm308_vm0, %v827_v55 }
 0x202   : >> { %1707 = vmatmul.mubr.msk.f32.gmra.mrb[12].mxu1 %vm308_vm0, %v829_v54  ;;  %1723 = vmatmul.mubr.msk.f32.vlgmr.msra.gmra.mrb[20].mxu0 %vm308_vm0, %v2103_v32 }
 0x203   : >> { %v833_v56 = vpop.permute.xlu0 %832 }
 0x204   : >> { %v831_v57 = vpop.permute.xlu1 %830 }
 0x205   : >> { %1709 = vmatprep.mubr.msk.f32.mxu1 %vm308_vm0, %v831_v57 }
 0x206   : >> { %1710 = vmatmul.mubr.msk.f32.gmra.mrb[14].mxu1 %vm308_vm0, %v833_v56 }
 0x207   : >> { %v837_v58 = vpop.permute.xlu0 %836 }
 0x208   : >> { %v835_v59 = vpop.permute.xlu1 %834 }
 0x209   : >> { %1712 = vmatprep.mubr.msk.f32.mxu1 %vm308_vm0, %v835_v59 }
 0x20a   : >> { %1713 = vmatmul.mubr.msk.f32.gmra.mrb[16].mxu1 %vm308_vm0, %v837_v58 }
 0x20b   : >> { %v841_v60 = vpop.permute.xlu0 %840 }
 0x20c   : >> { %v839_v61 = vpop.permute.xlu1 %838 }
 0x20d   : >> { %1715 = vmatprep.mubr.msk.f32.mxu1 %vm308_vm0, %v839_v61 }
 0x20e   : >> { %1716 = vmatmul.mubr.msk.f32.gmra.mrb[18].mxu1 %vm308_vm0, %v841_v60 }
 0x20f   : >> { %v1008_v62 = vpop.permute.xlu0 %1007  ;;  %1741 = vmatprep.mubr.msk.f32.mxu1 %vm308_vm0, %v2114_v36 }
 0x210   : >> { %v1006_v63 = vpop.permute.xlu1 %1005 }
 0x211   : >> { %1725 = vmatprep.mubr.msk.f32.mxu0 %vm308_vm0, %v1006_v63 }
 0x212   : >> { %1726 = vmatmul.mubr.msk.f32.gmra.mrb[22].mxu0 %vm308_vm0, %v1008_v62  ;;  %1742 = vmatmul.mubr.msk.f32.vlgmr.msra.gmra.mrb[20].mxu1 %vm308_vm0, %v2109_v34 }
 0x213   : >> { %v1012_v21 = vpop.permute.xlu0 %1011 }
 0x214   : >> { %v1010_v22 = vpop.permute.xlu1 %1009 }
 0x215   : >> { %1728 = vmatprep.mubr.msk.f32.mxu0 %vm308_vm0, %v1010_v22 }
 0x216   : >> { %1729 = vmatmul.mubr.msk.f32.gmra.mrb[24].mxu0 %vm308_vm0, %v1012_v21 }
 0x217   : >> { %v1016_v23 = vpop.permute.xlu0 %1015 }
 0x218   : >> { %v1014_v24 = vpop.permute.xlu1 %1013 }
 0x219   : >> { %1731 = vmatprep.mubr.msk.f32.mxu0 %vm308_vm0, %v1014_v24 }
 0x21a   : >> { %1732 = vmatmul.mubr.msk.f32.gmra.mrb[26].mxu0 %vm308_vm0, %v1016_v23 }
 0x21b   : >> { %v1187_v25 = vpop.permute.xlu0 %1186 }
 0x21c   : >> { %v1185_v26 = vpop.permute.xlu1 %1184 }
 0x21d   : >> { %1744 = vmatprep.mubr.msk.f32.mxu1 %vm308_vm0, %v1185_v26 }
 0x21e   : >> { %1745 = vmatmul.mubr.msk.f32.gmra.mrb[22].mxu1 %vm308_vm0, %v1187_v25 }
 0x21f   : >> { %v1191_v27 = vpop.permute.xlu0 %1190 }
 0x220   : >> { %v1189_v28 = vpop.permute.xlu1 %1188 }
 0x221   : >> { %1747 = vmatprep.mubr.msk.f32.mxu1 %vm308_vm0, %v1189_v28 }
 0x222   : >> { %1748 = vmatmul.mubr.msk.f32.gmra.mrb[24].mxu1 %vm308_vm0, %v1191_v27 }
 0x223   : >> { %v1195_v29 = vpop.permute.xlu0 %1194 }
 0x224   : >> { %v1193_v30 = vpop.permute.xlu1 %1192 }
 0x225   : >> { %1750 = vmatprep.mubr.msk.f32.mxu1 %vm308_vm0, %v1193_v30 }
 0x226   : >> { %1751 = vmatmul.mubr.msk.f32.gmra.mrb[26].mxu1 %vm308_vm0, %v1195_v29 }
 0x227   : >> { %v1020_v31 = vpop.permute.xlu0 %1019 }
 0x228   : >> { %v1018_v32 = vpop.permute.xlu1 %1017 }
 0x229   : >> { %1734 = vmatprep.mubr.msk.f32.mxu0 %vm308_vm0, %v1018_v32 }
 0x22a   : >> { %1735 = vmatmul.mubr.msk.f32.gmra.mrb[28].mxu0 %vm308_vm0, %v1020_v31 }
 0x22b   : >> { %v1199_v33 = vpop.permute.xlu0 %1198 }
 0x22c   : >> { %v1197_v34 = vpop.permute.xlu1 %1196 }
 0x22d   : >> { %1753 = vmatprep.mubr.msk.f32.mxu1 %vm308_vm0, %v1197_v34 }
 0x22e   : >> { %1754 = vmatmul.mubr.msk.f32.gmra.mrb[28].mxu1 %vm308_vm0, %v1199_v33 }
 0x22f   : >> { %v1203_v36 = vpop.permute.xlu0 %1202 }
 0x230   : >> { %v1201_v35 = vpop.permute.xlu1 %1200 }
 0x231   : >> { %1756 = vmatprep.mubr.msk.f32.mxu1 %vm308_vm0, %v1201_v35 }
 0x232   : >> { %1757 = vmatmul.mubr.msk.f32.gmra.mrb[30].mxu1 %vm308_vm0, %v1203_v36 }
 0x242   : >> { %v1667_v37 = vpop.f32.mrb[0].mxu1 }
 0x243   : >> { %v572_v38 = vpop.f32.mrb[1].mxu1  ;;  %v622_v45 = vmul.f32 %v1667_v37, %v1667_v37 }
 0x244   : >> { %v621_v46 = vmul.f32 %v572_v38, %v572_v38 }
 0x246   : >> { %v1686_v39 = vpop.f32.mrb[10].mxu0 }
 0x247   : >> { %v749_v40 = vpop.f32.mrb[11].mxu0  ;;  %v799_v28 = vmul.f32 %v1686_v39, %v1686_v39 }
 0x248   : >> { %v798_v29 = vmul.f32 %v749_v40, %v749_v40 }
 0x2b5   : >> { %v1670_v41 = vpop.f32.mrb[2].mxu1 }
 0x2b6   : >> { %v626_v42 = vmul.f32 %v1670_v41, %v1667_v37  ;;  %v582_v43 = vpop.f32.mrb[3].mxu1  ;;  %v624_v51 = vmul.f32 %v1670_v41, %v1670_v41 }
 0x2b7   : >> { %v625_v44 = vmul.f32 %v582_v43, %v572_v38  ;;  %v623_v52 = vmul.f32 %v582_v43, %v582_v43 }
 0x2b9   : >> { %v1673_v47 = vpop.f32.mrb[4].mxu1 }
 0x2ba   : >> { %v628_v48 = vsub.f32 %v1673_v47, %v622_v45  ;;  %v592_v49 = vpop.f32.mrb[5].mxu1 }
 0x2bb   : >> { %v627_v50 = vsub.f32 %v592_v49, %v621_v46 }
 0x2bd   : >> { %v1676_v53 = vpop.f32.mrb[6].mxu1 }
 0x2be   : >> { %v630_v54 = vsub.f32 %v1676_v53, %v624_v51  ;;  %v602_v55 = vpop.f32.mrb[7].mxu1 }
 0x2bf   : >> { %v629_v56 = vsub.f32 %v602_v55, %v623_v52 }
 0x2c0   : >> { %v638_v57 = vadd.f32 %v630_v54, %v628_v48 }
 0x2c1   : >> { %v637_v58 = vadd.f32 %v629_v56, %v627_v50  ;;  %v1679_v59 = vpop.f32.mrb[8].mxu1 }
 0x2c2   : >> { %v640_v60 = vadd.f32 0.0009, %v638_v57  ;;  %v632_v61 = vsub.f32 %v1679_v59, %v626_v42  ;;  %v612_v62 = vpop.f32.mrb[9].mxu1 }
 0x2c3   : >> { %v639_v63 = vadd.f32 0.0009, %v637_v58  ;;  %v631_v21 = vsub.f32 %v612_v62, %v625_v44 }
 0x2c4   : >> { %1839 = vrcp.f32 %v640_v60  ;;  %v634_v30 = vmul.f32 2.0, %v632_v61 }
 0x2c5   : >> { %1841 = vrcp.f32 %v639_v63  ;;  %v1689_v22 = vpop.f32.mrb[12].mxu0  ;;  %v1705_v23 = vpop.f32.mrb[10].mxu1  ;;  %v633_v32 = vmul.f32 2.0, %v631_v21 }
 0x2c6   : >> { %v803_v24 = vmul.f32 %v1689_v22, %v1686_v39  ;;  %v759_v25 = vpop.f32.mrb[13].mxu0  ;;  %v928_v26 = vpop.f32.mrb[11].mxu1  ;;  %v801_v36 = vmul.f32 %v1689_v22, %v1689_v22  ;;  %v636_v37 = vadd.f32 0.0009, %v634_v30  ;;  %v978_v62 = vmul.f32 %v1705_v23, %v1705_v23 }
 0x2c7   : >> { %v802_v27 = vmul.f32 %v759_v25, %v749_v40  ;;  %v800_v38 = vmul.f32 %v759_v25, %v759_v25  ;;  %v635_v43 = vadd.f32 0.0009, %v633_v32  ;;  %v977_v63 = vmul.f32 %v928_v26, %v928_v26 }
 0x2c9   : >> { %v1692_v31 = vpop.f32.mrb[14].mxu0 }
 0x2ca   : >> { %v805_v33 = vsub.f32 %v1692_v31, %v799_v28  ;;  %v769_v34 = vpop.f32.mrb[15].mxu0 }
 0x2cb   : >> { %v804_v35 = vsub.f32 %v769_v34, %v798_v29 }
 0x2cd   : >> { %v1695_v41 = vpop.f32.mrb[16].mxu0 }
 0x2ce   : >> { %v1840_v42 = vpop.eup %1839  ;;  %v807_v44 = vsub.f32 %v1695_v41, %v801_v36  ;;  %v779_v45 = vpop.f32.mrb[17].mxu0 }
 0x2cf   : >> { %v1842_v46 = vpop.eup %1841  ;;  %v644_v47 = vmul.f32 %v1840_v42, %v636_v37  ;;  %v806_v48 = vsub.f32 %v779_v45, %v800_v38 }
 0x2d0   : >> { %v642_v49 = vmul.f32 %v1842_v46, %v635_v43  ;;  %v815_v39 = vadd.f32 %v807_v44, %v805_v33 }
 0x2d1   : >> { %v814_v40 = vadd.f32 %v806_v48, %v804_v35  ;;  %v1698_v50 = vpop.f32.mrb[18].mxu0 }
 0x2d2   : >> { %v817_v51 = vadd.f32 0.0009, %v815_v39  ;;  %v809_v52 = vsub.f32 %v1698_v50, %v803_v24  ;;  %v789_v53 = vpop.f32.mrb[19].mxu0 }
 0x2d3   : >> { %v816_v54 = vadd.f32 0.0009, %v814_v40  ;;  %v808_v55 = vsub.f32 %v789_v53, %v802_v27 }
 0x2d4   : >> { %1843 = vrcp.f32 %v817_v51  ;;  %v811_v21 = vmul.f32 2.0, %v809_v52 }
 0x2d5   : >> { %1845 = vrcp.f32 %v816_v54  ;;  %v1708_v56 = vpop.f32.mrb[12].mxu1  ;;  %v1724_v57 = vpop.f32.mrb[20].mxu0  ;;  %v810_v25 = vmul.f32 2.0, %v808_v55 }
 0x2d6   : >> { %v982_v58 = vmul.f32 %v1708_v56, %v1705_v23  ;;  %v938_v59 = vpop.f32.mrb[13].mxu1  ;;  %v1107_v60 = vpop.f32.mrb[21].mxu0  ;;  %v980_v24 = vmul.f32 %v1708_v56, %v1708_v56  ;;  %v813_v31 = vadd.f32 0.0009, %v811_v21 }
 0x2d7   : >> { %v981_v61 = vmul.f32 %v938_v59, %v928_v26  ;;  %v979_v32 = vmul.f32 %v938_v59, %v938_v59  ;;  %v812_v34 = vadd.f32 0.0009, %v810_v25  ;;  %v1157_v59 = vmul.f32 %v1724_v57, %v1724_v57 }
 0x2d9   : >> { %v1711_v22 = vpop.f32.mrb[14].mxu1 }
 0x2da   : >> { %v984_v28 = vsub.f32 %v1711_v22, %v978_v62  ;;  %v948_v29 = vpop.f32.mrb[15].mxu1 }
 0x2db   : >> { %v983_v30 = vsub.f32 %v948_v29, %v977_v63 }
 0x2dd   : >> { %v1714_v27 = vpop.f32.mrb[16].mxu1 }
 0x2de   : >> { %v1844_v33 = vpop.eup %1843  ;;  %v986_v35 = vsub.f32 %v1714_v27, %v980_v24  ;;  %v958_v36 = vpop.f32.mrb[17].mxu1 }
 0x2df   : >> { %v1846_v37 = vpop.eup %1845  ;;  %v821_v38 = vmul.f32 %v1844_v33, %v813_v31  ;;  %v985_v41 = vsub.f32 %v958_v36, %v979_v32 }
 0x2e0   : >> { %v819_v42 = vmul.f32 %v1846_v37, %v812_v34  ;;  %v994_v23 = vadd.f32 %v986_v35, %v984_v28 }
 0x2e1   : >> { %v823_v26 = vmul.f32 %v821_v38, %v644_v47  ;;  %v993_v43 = vadd.f32 %v985_v41, %v983_v30  ;;  %v1717_v44 = vpop.f32.mrb[18].mxu1  ;;  %v1156_v47 = vmul.f32 %v1107_v60, %v1107_v60 }
 0x2e2   : >> { %v822_v45 = vmul.f32 %v819_v42, %v642_v49  ;;  %v996_v46 = vadd.f32 0.0009, %v994_v23  ;;  %v988_v48 = vsub.f32 %v1717_v44, %v982_v58  ;;  %v968_v39 = vpop.f32.mrb[19].mxu1 }
 0x2e3   : >> { %v995_v40 = vadd.f32 0.0009, %v993_v43  ;;  %v987_v50 = vsub.f32 %v968_v39, %v981_v61 }
 0x2e4   : >> { %1847 = vrcp.f32 %v996_v46  ;;  %v990_v62 = vmul.f32 2.0, %v988_v48 }
 0x2e5   : >> { %1849 = vrcp.f32 %v995_v40  ;;  %v1727_v51 = vpop.f32.mrb[22].mxu0  ;;  %v1743_v52 = vpop.f32.mrb[20].mxu1  ;;  %v989_v49 = vmul.f32 2.0, %v987_v50 }
 0x2e6   : >> { %v2231_v53 = vmul.f32 %v1727_v51, %v1724_v57  ;;  %v1117_v54 = vpop.f32.mrb[23].mxu0  ;;  %v1294_v55 = vpop.f32.mrb[21].mxu1  ;;  %v1159_v25 = vmul.f32 %v1727_v51, %v1727_v51  ;;  %v992_v61 = vadd.f32 0.0009, %v990_v62  ;;  %v1354_v41 = vmul.f32 %v1743_v52, %v1743_v52 }
 0x2e7   : >> { %v2233_v56 = vmul.f32 %v1117_v54, %v1107_v60  ;;  %v1158_v28 = vmul.f32 %v1117_v54, %v1117_v54  ;;  %v991_v24 = vadd.f32 0.0009, %v989_v49  ;;  %v1353_v44 = vmul.f32 %v1294_v55, %v1294_v55 }
 0x2e9   : >> { %v1730_v63 = vpop.f32.mrb[24].mxu0 }
 0x2ea   : >> { %v1163_v21 = vsub.f32 %v1730_v63, %v1157_v59  ;;  %v1127_v58 = vpop.f32.mrb[25].mxu0 }
 0x2eb   : >> { %v1162_v22 = vsub.f32 %v1127_v58, %v1156_v47 }
 0x2ed   : >> { %v1733_v29 = vpop.f32.mrb[26].mxu0 }
 0x2ee   : >> { %v1848_v30 = vpop.eup %1847  ;;  %v1165_v31 = vsub.f32 %v1733_v29, %v1159_v25  ;;  %v1137_v32 = vpop.f32.mrb[27].mxu0 }
 0x2ef   : >> { %v1850_v27 = vpop.eup %1849  ;;  %v1000_v33 = vmul.f32 %v1848_v30, %v992_v61  ;;  %v1164_v34 = vsub.f32 %v1137_v32, %v1158_v28 }
 0x2f0   : >> { %v998_v35 = vmul.f32 %v1850_v27, %v991_v24  ;;  %v1173_v57 = vadd.f32 %v1165_v31, %v1163_v21 }
 0x2f1   : >> { %v1002_v60 = vmul.f32 %v1000_v33, %v823_v26  ;;  %v1172_v36 = vadd.f32 %v1164_v34, %v1162_v22  ;;  %v1746_v37 = vpop.f32.mrb[22].mxu1 }
 0x2f2   : >> { %v1001_v38 = vmul.f32 %v998_v35, %v822_v45  ;;  %v1356_v42 = vmul.f32 %v1746_v37, %v1746_v37  ;;  %v1358_v23 = vmul.f32 %v1746_v37, %v1743_v52  ;;  %v1304_v43 = vpop.f32.mrb[23].mxu1  ;;  %v1175_v46 = vadd.f32 0.0009, %v1173_v57 }
 0x2f3   : >> { %v1355_v48 = vmul.f32 %v1304_v43, %v1304_v43  ;;  %v1357_v39 = vmul.f32 %v1304_v43, %v1294_v55  ;;  %v1174_v54 = vadd.f32 0.0009, %v1172_v36 }
 0x2f4   : >> { %v1384_v40 = vadd.f32 %v1356_v42, %v1354_v41  ;;  %1851 = vrcp.f32 %v1175_v46  ;;  %v1380_v22 = vmul.f32 2.0, %v1358_v23 }
 0x2f5   : >> { %v1383_v50 = vadd.f32 %v1355_v48, %v1353_v44  ;;  %v1749_v51 = vpop.f32.mrb[24].mxu1  ;;  %v1379_v61 = vmul.f32 2.0, %v1357_v39 }
 0x2f6   : >> { %v1386_v59 = vadd.f32 0.0001, %v1384_v40  ;;  %v1360_v47 = vsub.f32 %v1749_v51, %v1354_v41  ;;  %v1314_v62 = vpop.f32.mrb[25].mxu1  ;;  %v1382_v33 = vadd.f32 0.0001, %v1380_v22 }
 0x2f7   : >> { %v1385_v26 = vadd.f32 0.0001, %v1383_v50  ;;  %v1359_v63 = vsub.f32 %v1314_v62, %v1353_v44  ;;  %v1381_v36 = vadd.f32 0.0001, %v1379_v61 }
 0x2f8   : >> { %1853 = vrcp.f32 %v1386_v59 }
 0x2f9   : >> { %1855 = vrcp.f32 %v1385_v26  ;;  %v1752_v45 = vpop.f32.mrb[26].mxu1 }
 0x2fa   : >> { %1857 = vrcp.f32 %v1174_v54  ;;  %v1362_v52 = vsub.f32 %v1752_v45, %v1356_v42  ;;  %v1324_v49 = vpop.f32.mrb[27].mxu1 }
 0x2fb   : >> { %v1361_v21 = vsub.f32 %v1324_v49, %v1355_v48 }
 0x2fc   : >> { %v1370_v58 = vadd.f32 %v1362_v52, %v1360_v47 }
 0x2fd   : >> { %v1369_v55 = vadd.f32 %v1361_v21, %v1359_v63  ;;  %v1736_v25 = vpop.f32.mrb[28].mxu0 }
 0x2fe   : >> { %v1372_v28 = vadd.f32 0.0009, %v1370_v58  ;;  %v1167_v29 = vsub.f32 %v1736_v25, %v2231_v53  ;;  %v1147_v30 = vpop.f32.mrb[29].mxu0  ;;  %v1852_v27 = vpop.eup %1851 }
 0x2ff   : >> { %v1371_v24 = vadd.f32 0.0009, %v1369_v55  ;;  %v1166_v31 = vsub.f32 %v1147_v30, %v2233_v56 }
 0x300   : >> { %1859 = vrcp.f32 %v1372_v28  ;;  %v1169_v32 = vmul.f32 2.0, %v1167_v29 }
 0x301   : >> { %1861 = vrcp.f32 %v1371_v24  ;;  %v1168_v34 = vmul.f32 2.0, %v1166_v31  ;;  %v1755_v35 = vpop.f32.mrb[28].mxu1 }
 0x302   : >> { %v1854_v57 = vpop.eup %1853  ;;  %v1171_v37 = vadd.f32 0.0009, %v1169_v32  ;;  %v1364_v41 = vsub.f32 %v1755_v35, %v1358_v23  ;;  %v1334_v42 = vpop.f32.mrb[29].mxu1 }
 0x303   : >> { %v1856_v43 = vpop.eup %1855  ;;  %v1390_v44 = vmul.f32 %v1854_v57, %v1382_v33  ;;  %v1170_v46 = vadd.f32 0.0009, %v1168_v34  ;;  %v1363_v53 = vsub.f32 %v1334_v42, %v1357_v39 }
 0x304   : >> { %v1858_v48 = vpop.eup %1857  ;;  %v1388_v40 = vmul.f32 %v1856_v43, %v1381_v36  ;;  %v1179_v50 = vmul.f32 %v1852_v27, %v1171_v37  ;;  %v1366_v51 = vmul.f32 2.0, %v1364_v41 }
 0x305   : >> { %v1177_v56 = vmul.f32 %v1858_v48, %v1170_v46  ;;  %v1758_v54 = vpop.f32.mrb[30].mxu1  ;;  %v1365_v47 = vmul.f32 2.0, %v1363_v53 }
 0x306   : >> { %v1181_v59 = vmul.f32 %v1179_v50, %v1002_v60  ;;  %v1344_v62 = vpop.f32.mrb[31].mxu1  ;;  %v1368_v63 = vadd.f32 0.0009, %v1366_v51  ;;  %v1398_v29 = vmul.f32 0.975, %v1758_v54 }
 0x307   : >> { %v1180_v26 = vmul.f32 %v1177_v56, %v1001_v38  ;;  %v1367_v52 = vadd.f32 0.0009, %v1365_v47  ;;  %v1397_v24 = vmul.f32 0.975, %v1344_v62 }
 0x30a   : >> { %v1860_v45 = vpop.eup %1859 }
 0x30b   : >> { %v1862_v49 = vpop.eup %1861  ;;  %v1376_v23 = vmul.f32 %v1860_v45, %v1368_v63 }
 0x30c   : >> { %v1374_v21 = vmul.f32 %v1862_v49, %v1367_v52 }
 0x30d   : >> { %v1378_v58 = vmul.f32 %v1376_v23, %v1181_v59 }
 0x30e   : >> { %v1377_v22 = vmul.f32 %v1374_v21, %v1180_v26 }
 0x30f   : >> { %v1392_v55 = vmul.f32 %v1390_v44, %v1378_v58 }
 0x310   : >> { %v1391_v39 = vmul.f32 %v1388_v40, %v1377_v22 }
 0x311   : >> { %v1394_v25 = vsub.f32 1.0, %v1392_v55 }
 0x312   : >> { %v1393_v61 = vsub.f32 1.0, %v1391_v39 }
 0x313   : >> { %v1396_v28 = vmul.f32 0.025, %v1394_v25 }
 0x314   : >> { %v1395_v30 = vmul.f32 0.025, %v1393_v61 }
 0x315   : >> { %v1400_v60 = vadd.f32 %v1398_v29, %v1396_v28 }
 0x316   : >> { %v1399_v31 = vadd.f32 %v1397_v24, %v1395_v30 }
 0x317   : >> { %v1402_v32 = vmul.f32 20.0, %v1400_v60 }
 0x318   : >> { %v1401_v38 = vmul.f32 20.0, %v1399_v31 }
 0x319   : >> { %v1406_v27 = vsel %vm308_vm0, %v1402_v32, 0.0 }
 0x31a   : >> { %1407 = vadd.xlane.f32.xlu0 %v1406_v27  ;;  %v1403_v33 = vsel %vm308_vm0, %v1401_v38, 0.0 }
 0x31b   : >> { %1404 = vadd.xlane.f32.xlu1 %v1403_v33 }
 0x3a7   : >> { %v1408_v34 = vpop.xlane.xlu0 %1407 }
 0x3a8   : >> { %v1405_v35 = vpop.xlane.xlu1 %1404 }
 0x3a9   : >> { %v1409_v57 = vadd.f32 %v1408_v34, %v1405_v35 }
 0x3ab   : >> { %v1410_v36 = vrot.slane %v1409_v57, 4 }
 0x3ad   : >> { %v1411_v37 = vadd.f32 %v1410_v36, %v1409_v57 }
 0x3af   : >> { %v1412_v41 = vrot.slane %v1411_v37, 2 }
 0x3b1   : >> { %v1413_v42 = vadd.f32 %v1412_v41, %v1411_v37 }
 0x3b3   : >> { %v1414_v43 = vrot.slane %v1413_v42, 1  ;;  %248 = sbr.rel (!%p246_p5) target bundleno = 16 (0x10), region = 78 }
 0x3b5   : >> { %v1415_v44 = vadd.f32 %v1414_v43, %v1413_v42 }
 0x3b7   : >> { %v1416_v46 = vadd.f32 %v1881_v20, %v1415_v44  }
 0x3b9   : >> { %v2258_v20 = vmov %v1416_v46  ;;  %1418 = vst.msk [vmem:[%s223_s21] sm:$0x1] (%p246_p5), %vm1417_vm5, %v1416_v46 }
 0x3ba PF: > { %s14_s15 = sadd.s32 1, %s1877_s15  }
 0x3bb   : > { %p11_p6 = scmp.ge.s32.totalorder %s14_s15, 4  }
 0x3bd   :  { %13 = sbr.rel (!%p11_p6) target bundleno = 1 (0x1), region = 89 }

</bundles_post_ra>
